<compile_context>
chip_gen: v7x
topology: tpu7x:2x2x1
jax: 0.10.0
libtpu: 0.0.40
codegen_flags: <defaults>
</compile_context>

<pallas_src>
import functools

import jax
import jax.numpy as jnp
from jax.experimental import pallas as pl
from jax.experimental.pallas import tpu as pltpu

EPS = 1e-5
LANE = 128
VMEM_LIMIT = 48 * 1024 * 1024   # explicit scoped-VMEM budget (safe on v5e/v6e/v7x)


def _round_up(x, m):
    return (x + m - 1) // m * m


def _row_tile(m, cap=512):
    """Largest multiple-of-8 divisor of m that is <= cap and yields >= 2 tiles;
    falls back to a single full-size block (always legal for a full dim)."""
    if m < 16:
        return m
    cap = min(cap, m // 2)
    best = None
    for t in range(8, cap + 1, 8):
        if m % t == 0:
            best = t
    return best if best is not None else m


# ---------------------------------------------------------------------------
# Kernels
# ---------------------------------------------------------------------------
def _maxpool_kernel(x_ref, o_ref, *, cp):
    # x_ref: (tr, 2, Wp, 2*cp) view of NHWC rows; cp is a multiple of 128 so the
    # lane-dim split below is 128-aligned.
    x = x_ref[...]
    m = jnp.max(x, axis=1)                                    # pool the H pair
    o_ref[...] = jnp.maximum(m[:, :, :cp], m[:, :, cp:])      # pool the W pair


def _conv3x3_kernel(x_ref, w_ref, scale_ref, shift_ref, y_ref, stats_ref,
                    xpad_ref, *, hp, wp, apply_input_relu):
    """3x3 'same' conv of one image as 9 accumulated MXU matmuls.

    x_ref:     (1, hp, wp, cin)   raw (pre-BN) input image
    w_ref:     (9, cin, cout)     tap-major weights, k = kh*3 + kw
    scale_ref: (1, cin)           fused input-BN scale (ones for the 1st conv)
    shift_ref: (1, cin)           fused input-BN shift (zeros for the 1st conv)
    y_ref:     (1, hp, wp, cout)  raw conv output (pre-BN)
    stats_ref: (1, 2, cout)       per-image [sum ; sum of squares] of y
    xpad_ref:  VMEM (hp+2, wp+2, cin) scratch: normalized, zero-padded image.
    """
    cin = x_ref.shape[-1]
    cout = y_ref.shape[-1]

    x = x_ref[0].astype(jnp.float32)                          # (hp, wp, cin)
    x = x * scale_ref[...] + shift_ref[...]                   # fused BN (identity for conv1)
    if apply_input_relu:
        x = jnp.maximum(x, 0.0)

    # Zero halo, then write the normalized interior (padding is applied AFTER
    # BN+ReLU, exactly like Conv2d(padding=1) on the normalized activations).
    xpad_ref[...] = jnp.zeros_like(xpad_ref)
    xpad_ref[pl.ds(1, hp), pl.ds(1, wp), :] = x

    acc = jnp.zeros((hp * wp, cout), jnp.float32)
    for kh in range(3):
        for kw in range(3):
            win = xpad_ref[pl.ds(kh, hp), pl.ds(kw, wp), :]   # (hp, wp, cin)
            a = win.reshape(hp * wp, cin)
            acc = acc + jnp.dot(a, w_ref[kh * 3 + kw],
                                preferred_element_type=jnp.float32)

    # BatchNorm partial statistics (training mode: batch mean / biased var).
    stats_ref[0, 0:1, :] = jnp.sum(acc, axis=0, keepdims=True)
    stats_ref[0, 1:2, :] = jnp.sum(acc * acc, axis=0, keepdims=True)

    y_ref[0] = acc.reshape(hp, wp, cout).astype(y_ref.dtype)


def _bn_relu_kernel(x_ref, scale_ref, shift_ref, o_ref):
    # fused per-channel scale/shift + ReLU on a (tm, C) tile
    o_ref[...] = jnp.maximum(x_ref[...] * scale_ref[...] + shift_ref[...], 0.0)


# ---------------------------------------------------------------------------
# Pallas wrappers
# ---------------------------------------------------------------------------
def maxpool2x2(x_nhwc):
    """2x2 / stride-2 max pool.  (N, H, W, C) -> (N, H/2, W/2, C); C % 128 == 0."""
    N, H, W, C = x_nhwc.shape
    hp, wp = H // 2, W // 2
    rows = N * hp
    xr = x_nhwc.reshape(rows, 2, wp, 2 * C)          # free, contiguous reshape
    tr = _row_tile(rows, cap=128)
    out = pl.pallas_call(
        functools.partial(_maxpool_kernel, cp=C),
        out_shape=jax.ShapeDtypeStruct((rows, wp, C), x_nhwc.dtype),
        grid_spec=pltpu.PrefetchScalarGridSpec(
            num_scalar_prefetch=0,
            grid=(rows // tr,),
            in_specs=[pl.BlockSpec((tr, 2, wp, 2 * C), lambda i: (i, 0, 0, 0))],
            out_specs=pl.BlockSpec((tr, wp, C), lambda i: (i, 0, 0)),
        ),
        compiler_params=pltpu.CompilerParams(
            dimension_semantics=("parallel",),
            vmem_limit_bytes=VMEM_LIMIT),
    )(xr)
    return out.reshape(N, hp, wp, C)


def conv3x3_raw(x, w, in_scale, in_shift, *, apply_input_relu):
    """x: (N, hp, wp, cin); w: (9, cin, cout).
    Returns raw conv output (N, hp, wp, cout) and per-image BN partial sums
    (N, 2, cout)."""
    N, hp, wp, cin = x.shape
    cout = w.shape[-1]
    kernel = functools.partial(_conv3x3_kernel, hp=hp, wp=wp,
                               apply_input_relu=apply_input_relu)
    y, stats = pl.pallas_call(
        kernel,
        out_shape=(jax.ShapeDtypeStruct((N, hp, wp, cout), jnp.float32),
                   jax.ShapeDtypeStruct((N, 2, cout), jnp.float32)),
        grid_spec=pltpu.PrefetchScalarGridSpec(
            num_scalar_prefetch=0,
            grid=(N,),
            in_specs=[
                pl.BlockSpec((1, hp, wp, cin), lambda n: (n, 0, 0, 0)),
                pl.BlockSpec((9, cin, cout), lambda n: (0, 0, 0)),
                pl.BlockSpec((1, cin), lambda n: (0, 0)),
                pl.BlockSpec((1, cin), lambda n: (0, 0)),
            ],
            out_specs=(
                pl.BlockSpec((1, hp, wp, cout), lambda n: (n, 0, 0, 0)),
                pl.BlockSpec((1, 2, cout), lambda n: (n, 0, 0)),
            ),
            scratch_shapes=[pltpu.VMEM((hp + 2, wp + 2, cin), jnp.float32)],
        ),
        compiler_params=pltpu.CompilerParams(
            dimension_semantics=("parallel",),
            vmem_limit_bytes=VMEM_LIMIT),
    )(x, w, in_scale, in_shift)
    return y, stats


def bn_relu(x2d, scale, shift):
    """x2d: (M, C) raw conv output; scale/shift: (1, C).  Fused BN-apply + ReLU."""
    M, C = x2d.shape
    tm = _row_tile(M, cap=512)
    return pl.pallas_call(
        _bn_relu_kernel,
        out_shape=jax.ShapeDtypeStruct((M, C), jnp.float32),
        grid_spec=pltpu.PrefetchScalarGridSpec(
            num_scalar_prefetch=0,
            grid=(M // tm,),
            in_specs=[
                pl.BlockSpec((tm, C), lambda i: (i, 0)),
                pl.BlockSpec((1, C), lambda i: (0, 0)),
                pl.BlockSpec((1, C), lambda i: (0, 0)),
            ],
            out_specs=pl.BlockSpec((tm, C), lambda i: (i, 0)),
        ),
        compiler_params=pltpu.CompilerParams(
            dimension_semantics=("parallel",),
            vmem_limit_bytes=VMEM_LIMIT),
    )(x2d, scale, shift)


# ---------------------------------------------------------------------------
# BN finalize + parameter plumbing (tiny XLA ops)
# ---------------------------------------------------------------------------
def _bn_scale_shift(stats, count, gamma, beta):
    s = jnp.sum(stats[:, 0, :], axis=0)
    ss = jnp.sum(stats[:, 1, :], axis=0)
    mean = s / count
    var = jnp.maximum(ss / count - mean * mean, 0.0)          # biased variance
    scale = gamma * jax.lax.rsqrt(var + EPS)
    shift = beta - mean * scale
    return scale.reshape(1, -1), shift.reshape(1, -1)


def _prep_weight(w_oihw, cinp, coutp):
    """PyTorch (Cout, Cin, 3, 3) -> tap-major (9, cinp, coutp), zero-padded."""
    co, ci, kh, kw = w_oihw.shape
    wt = jnp.transpose(w_oihw, (2, 3, 1, 0)).reshape(kh * kw, ci, co)
    return jnp.pad(wt, ((0, 0), (0, cinp - ci), (0, coutp - co)))


def _pad_vec(v, cp):
    return jnp.pad(v, (0, cp - v.shape[0]))


def down_forward(x_nchw, params):
    """Down.forward: MaxPool2d(2) -> DoubleConv.  Input/output NCHW."""
    N, Cin, H, W = x_nchw.shape
    Cout = params["w1"].shape[0]
    cinp, coutp = _round_up(Cin, LANE), _round_up(Cout, LANE)
    hp, wp = H // 2, W // 2
    count = float(N * hp * wp)

    # NCHW -> NHWC, zero-pad channels to a lane multiple (lane-dense blocks).
    x = jnp.transpose(x_nchw, (0, 2, 3, 1)).astype(jnp.float32)
    x = jnp.pad(x, ((0, 0), (0, 0), (0, 0), (0, cinp - Cin)))

    pooled = maxpool2x2(x)                                    # (N, hp, wp, cinp)

    w1 = _prep_weight(params["w1"], cinp, coutp)
    w2 = _prep_weight(params["w2"], coutp, coutp)
    g1, b1 = _pad_vec(params["g1"], coutp), _pad_vec(params["b1"], coutp)
    g2, b2 = _pad_vec(params["g2"], coutp), _pad_vec(params["b2"], coutp)

    # conv1 (raw output) + per-channel batch statistics from its epilogue
    ident_s = jnp.ones((1, cinp), jnp.float32)
    ident_t = jnp.zeros((1, cinp), jnp.float32)
    y1, st1 = conv3x3_raw(pooled, w1, ident_s, ident_t, apply_input_relu=False)
    sc1, sh1 = _bn_scale_shift(st1, count, g1, b1)

    # conv2 with BN1 + ReLU1 fused at its input, plus statistics for BN2
    y2, st2 = conv3x3_raw(y1, w2, sc1, sh1, apply_input_relu=True)
    sc2, sh2 = _bn_scale_shift(st2, count, g2, b2)

    # BN2 + ReLU2 (fused scale/shift), drop channel padding, back to NCHW
    out = bn_relu(y2.reshape(N * hp * wp, coutp), sc2, sh2)
    out = out.reshape(N, hp, wp, coutp)[..., :Cout]
    return jnp.transpose(out, (0, 3, 1, 2))


def init_params(key, in_channels, out_channels):
    k1, k2 = jax.random.split(key)
    # Deterministic synthetic init (Kaiming-like scale); PyTorch BN defaults.
    w1 = jax.random.normal(k1, (out_channels, in_channels, 3, 3),
                           jnp.float32) * (2.0 / (in_channels * 9)) ** 0.5
    w2 = jax.random.normal(k2, (out_channels, out_channels, 3, 3),
                           jnp.float32) * (2.0 / (out_channels * 9)) ** 0.5
    return {
        "w1": w1, "g1": jnp.ones((out_channels,), jnp.float32),
        "b1": jnp.zeros((out_channels,), jnp.float32),
        "w2": w2, "g2": jnp.ones((out_channels,), jnp.float32),
        "b2": jnp.zeros((out_channels,), jnp.float32),
    }


if __name__ == "__main__":
    key = jax.random.PRNGKey(0)
    kx, kp = jax.random.split(key)

    N, Cin, Cout, H, W = 2, 4, 8, 16, 16
    x = jax.random.normal(kx, (N, Cin, H, W), jnp.float32)    # NCHW like PyTorch
    params = init_params(kp, Cin, Cout)

    fwd = jax.jit(functools.partial(down_forward, params=params))
    out = fwd(x)
    jax.block_until_ready(out)

    assert out.shape == (N, Cout, H // 2, W // 2), out.shape
    assert bool(jnp.all(jnp.isfinite(out))), "non-finite output"
    print("KERNEL_OK")
</pallas_src>

<mosaic_0001>
module attributes {stable_mosaic.version = 11 : i64} {
  func.func @_maxpool_kernel(%arg0: i32, %arg1: memref<8x2x8x256xf32, #tpu.memory_space<vmem>>, %arg2: memref<8x8x128xf32, #tpu.memory_space<vmem>>) attributes {dimension_semantics = [#tpu.dimension_semantics<parallel>], iteration_bounds = array<i64: 2>, scalar_prefetch = 0 : i64, scratch_operands = 0 : i64, tpu.core_type = #tpu.core_type<tc>, window_params = [{transform_indices = @transform_0, window_bounds = array<i64: 8, 2, 8, 256>}, {transform_indices = @transform_1, window_bounds = array<i64: 8, 8, 128>}]} {
    %c0 = arith.constant 0 : index
    %c0_0 = arith.constant 0 : index
    %c0_1 = arith.constant 0 : index
    %c0_2 = arith.constant 0 : index
    %0 = vector.load %arg1[%c0, %c0_0, %c0_1, %c0_2] : memref<8x2x8x256xf32, #tpu.memory_space<vmem>>, vector<8x2x8x256xf32>
    %cst = arith.constant dense<0xFF800000> : vector<8x8x256xf32>
    %1 = vector.multi_reduction <maximumf>, %0, %cst [1] : vector<8x2x8x256xf32> to vector<8x8x256xf32>
    %2 = vector.extract_strided_slice %1 {offsets = [0, 0, 0], sizes = [8, 8, 128], strides = [1, 1, 1]} : vector<8x8x256xf32> to vector<8x8x128xf32>
    %3 = vector.extract_strided_slice %1 {offsets = [0, 0, 128], sizes = [8, 8, 128], strides = [1, 1, 1]} : vector<8x8x256xf32> to vector<8x8x128xf32>
    %4 = arith.maximumf %2, %3 : vector<8x8x128xf32>
    %c0_3 = arith.constant 0 : index
    %c0_4 = arith.constant 0 : index
    %c0_5 = arith.constant 0 : index
    %5 = vector.load %arg2[%c0_3, %c0_4, %c0_5] : memref<8x8x128xf32, #tpu.memory_space<vmem>>, vector<8x8x128xf32>
    tpu.vector_store %arg2[%c0_3, %c0_4, %c0_5], %4 {strides = array<i32>} : memref<8x8x128xf32, #tpu.memory_space<vmem>>, vector<8x8x128xf32>,
    return
  }
  func.func @transform_0(%arg0: i32) -> (i32, i32, i32, i32) {
    %c0_i32 = arith.constant 0 : i32
    %c0_i32_0 = arith.constant 0 : i32
    %c0_i32_1 = arith.constant 0 : i32
    %c0_i32_2 = arith.constant 0 : i32
    return %arg0, %c0_i32, %c0_i32_0, %c0_i32_1 : i32, i32, i32, i32
  }
  func.func @transform_1(%arg0: i32) -> (i32, i32, i32) {
    %c0_i32 = arith.constant 0 : i32
    %c0_i32_0 = arith.constant 0 : i32
    %c0_i32_1 = arith.constant 0 : i32
    return %arg0, %c0_i32, %c0_i32_0 : i32, i32, i32
  }
}

module attributes {stable_mosaic.version = 11 : i64} {
  func.func @_conv3x3_kernel(%arg0: i32, %arg1: memref<1x8x8x128xf32, #tpu.memory_space<vmem>>, %arg2: memref<9x128x128xf32, #tpu.memory_space<vmem>>, %arg3: memref<1x128xf32, #tpu.memory_space<vmem>>, %arg4: memref<1x128xf32, #tpu.memory_space<vmem>>, %arg5: memref<1x8x8x128xf32, #tpu.memory_space<vmem>>, %arg6: memref<1x2x128xf32, #tpu.memory_space<vmem>>, %arg7: memref<10x10x128xf32, #tpu.memory_space<vmem>>) attributes {dimension_semantics = [#tpu.dimension_semantics<parallel>], iteration_bounds = array<i64: 2>, scalar_prefetch = 0 : i64, scratch_operands = 1 : i64, tpu.core_type = #tpu.core_type<tc>, window_params = [{transform_indices = @transform_0, window_bounds = array<i64: 1, 8, 8, 128>}, {pipeline_mode = #tpu.pipeline_mode<synchronous>, transform_indices = @transform_1, window_bounds = array<i64: 9, 128, 128>}, {pipeline_mode = #tpu.pipeline_mode<synchronous>, transform_indices = @transform_2, window_bounds = array<i64: 1, 128>}, {pipeline_mode = #tpu.pipeline_mode<synchronous>, transform_indices = @transform_3, window_bounds = array<i64: 1, 128>}, {transform_indices = @transform_4, window_bounds = array<i64: 1, 8, 8, 128>}, {transform_indices = @transform_5, window_bounds = array<i64: 1, 2, 128>}]} {
    %c0 = arith.constant 0 : index
    %c0_0 = arith.constant 0 : index
    %c0_1 = arith.constant 0 : index
    %c0_2 = arith.constant 0 : index
    %0 = vector.load %arg1[%c0, %c0_0, %c0_1, %c0_2] : memref<1x8x8x128xf32, #tpu.memory_space<vmem>>, vector<1x8x8x128xf32>
    %1 = vector.shape_cast %0 : vector<1x8x8x128xf32> to vector<8x8x128xf32>
    %c0_3 = arith.constant 0 : index
    %c0_4 = arith.constant 0 : index
    %2 = vector.load %arg3[%c0_3, %c0_4] : memref<1x128xf32, #tpu.memory_space<vmem>>, vector<1x128xf32>
    %3 = vector.shape_cast %2 : vector<1x128xf32> to vector<1x1x128xf32>
    %4 = vector.broadcast %3 : vector<1x1x128xf32> to vector<8x8x128xf32>
    %5 = arith.mulf %1, %4 : vector<8x8x128xf32>
    %c0_5 = arith.constant 0 : index
    %c0_6 = arith.constant 0 : index
    %6 = vector.load %arg4[%c0_5, %c0_6] : memref<1x128xf32, #tpu.memory_space<vmem>>, vector<1x128xf32>
    %7 = vector.shape_cast %6 : vector<1x128xf32> to vector<1x1x128xf32>
    %8 = vector.broadcast %7 : vector<1x1x128xf32> to vector<8x8x128xf32>
    %9 = arith.addf %5, %8 : vector<8x8x128xf32>
    %cst = arith.constant 0.000000e+00 : f32
    %10 = vector.broadcast %cst : f32 to vector<10x10x128xf32>
    %c0_7 = arith.constant 0 : index
    %c0_8 = arith.constant 0 : index
    %c0_9 = arith.constant 0 : index
    %11 = vector.load %arg7[%c0_7, %c0_8, %c0_9] : memref<10x10x128xf32, #tpu.memory_space<vmem>>, vector<10x10x128xf32>
    tpu.vector_store %arg7[%c0_7, %c0_8, %c0_9], %10 {strides = array<i32>} : memref<10x10x128xf32, #tpu.memory_space<vmem>>, vector<10x10x128xf32>,
    %c1 = arith.constant 1 : index
    %c1_10 = arith.constant 1 : index
    %c0_11 = arith.constant 0 : index
    %12 = vector.load %arg7[%c1, %c1_10, %c0_11] : memref<10x10x128xf32, #tpu.memory_space<vmem>>, vector<8x8x128xf32>
    tpu.vector_store %arg7[%c1, %c1_10, %c0_11], %9 {strides = array<i32>} : memref<10x10x128xf32, #tpu.memory_space<vmem>>, vector<8x8x128xf32>,
    %cst_12 = arith.constant 0.000000e+00 : f32
    %13 = vector.broadcast %cst_12 : f32 to vector<64x128xf32>
    %c0_13 = arith.constant 0 : index
    %c0_14 = arith.constant 0 : index
    %c0_15 = arith.constant 0 : index
    %14 = vector.load %arg7[%c0_13, %c0_14, %c0_15] : memref<10x10x128xf32, #tpu.memory_space<vmem>>, vector<8x8x128xf32>
    %15 = vector.shape_cast %14 : vector<8x8x128xf32> to vector<64x128xf32>
    %c0_16 = arith.constant 0 : index
    %c0_17 = arith.constant 0 : index
    %c0_18 = arith.constant 0 : index
    %16 = vector.load %arg2[%c0_16, %c0_17, %c0_18] : memref<9x128x128xf32, #tpu.memory_space<vmem>>, vector<1x128x128xf32>
    %17 = vector.shape_cast %16 : vector<1x128x128xf32> to vector<128x128xf32>
    %cst_19 = arith.constant dense<0.000000e+00> : vector<64x128xf32>
    %18 = tpu.matmul %15, %17, %cst_19 {dimension_numbers = #tpu.dot_dimension_numbers<[1], [0], [0], [1], [0, 0, 1, 1], [], []>} : vector<64x128xf32>, vector<128x128xf32>, vector<64x128xf32> -> vector<64x128xf32>
    %19 = arith.addf %13, %18 : vector<64x128xf32>
    %c0_20 = arith.constant 0 : index
    %c1_21 = arith.constant 1 : index
    %c0_22 = arith.constant 0 : index
    %20 = vector.load %arg7[%c0_20, %c1_21, %c0_22] : memref<10x10x128xf32, #tpu.memory_space<vmem>>, vector<8x8x128xf32>
    %21 = vector.shape_cast %20 : vector<8x8x128xf32> to vector<64x128xf32>
    %c1_23 = arith.constant 1 : index
    %c0_24 = arith.constant 0 : index
    %c0_25 = arith.constant 0 : index
    %22 = vector.load %arg2[%c1_23, %c0_24, %c0_25] : memref<9x128x128xf32, #tpu.memory_space<vmem>>, vector<1x128x128xf32>
    %23 = vector.shape_cast %22 : vector<1x128x128xf32> to vector<128x128xf32>
    %cst_26 = arith.constant dense<0.000000e+00> : vector<64x128xf32>
    %24 = tpu.matmul %21, %23, %cst_26 {dimension_numbers = #tpu.dot_dimension_numbers<[1], [0], [0], [1], [0, 0, 1, 1], [], []>} : vector<64x128xf32>, vector<128x128xf32>, vector<64x128xf32> -> vector<64x128xf32>
    %25 = arith.addf %19, %24 : vector<64x128xf32>
    %c0_27 = arith.constant 0 : index
    %c2 = arith.constant 2 : index
    %c0_28 = arith.constant 0 : index
    %26 = vector.load %arg7[%c0_27, %c2, %c0_28] : memref<10x10x128xf32, #tpu.memory_space<vmem>>, vector<8x8x128xf32>
    %27 = vector.shape_cast %26 : vector<8x8x128xf32> to vector<64x128xf32>
    %c2_29 = arith.constant 2 : index
    %c0_30 = arith.constant 0 : index
    %c0_31 = arith.constant 0 : index
    %28 = vector.load %arg2[%c2_29, %c0_30, %c0_31] : memref<9x128x128xf32, #tpu.memory_space<vmem>>, vector<1x128x128xf32>
    %29 = vector.shape_cast %28 : vector<1x128x128xf32> to vector<128x128xf32>
    %cst_32 = arith.constant dense<0.000000e+00> : vector<64x128xf32>
    %30 = tpu.matmul %27, %29, %cst_32 {dimension_numbers = #tpu.dot_dimension_numbers<[1], [0], [0], [1], [0, 0, 1, 1], [], []>} : vector<64x128xf32>, vector<128x128xf32>, vector<64x128xf32> -> vector<64x128xf32>
    %31 = arith.addf %25, %30 : vector<64x128xf32>
    %c1_33 = arith.constant 1 : index
    %c0_34 = arith.constant 0 : index
    %c0_35 = arith.constant 0 : index
    %32 = vector.load %arg7[%c1_33, %c0_34, %c0_35] : memref<10x10x128xf32, #tpu.memory_space<vmem>>, vector<8x8x128xf32>
    %33 = vector.shape_cast %32 : vector<8x8x128xf32> to vector<64x128xf32>
    %c3 = arith.constant 3 : index
    %c0_36 = arith.constant 0 : index
    %c0_37 = arith.constant 0 : index
    %34 = vector.load %arg2[%c3, %c0_36, %c0_37] : memref<9x128x128xf32, #tpu.memory_space<vmem>>, vector<1x128x128xf32>
    %35 = vector.shape_cast %34 : vector<1x128x128xf32> to vector<128x128xf32>
    %cst_38 = arith.constant dense<0.000000e+00> : vector<64x128xf32>
    %36 = tpu.matmul %33, %35, %cst_38 {dimension_numbers = #tpu.dot_dimension_numbers<[1], [0], [0], [1], [0, 0, 1, 1], [], []>} : vector<64x128xf32>, vector<128x128xf32>, vector<64x128xf32> -> vector<64x128xf32>
    %37 = arith.addf %31, %36 : vector<64x128xf32>
    %c1_39 = arith.constant 1 : index
    %c1_40 = arith.constant 1 : index
    %c0_41 = arith.constant 0 : index
    %38 = vector.load %arg7[%c1_39, %c1_40, %c0_41] : memref<10x10x128xf32, #tpu.memory_space<vmem>>, vector<8x8x128xf32>
    %39 = vector.shape_cast %38 : vector<8x8x128xf32> to vector<64x128xf32>
    %c4 = arith.constant 4 : index
    %c0_42 = arith.constant 0 : index
    %c0_43 = arith.constant 0 : index
    %40 = vector.load %arg2[%c4, %c0_42, %c0_43] : memref<9x128x128xf32, #tpu.memory_space<vmem>>, vector<1x128x128xf32>
    %41 = vector.shape_cast %40 : vector<1x128x128xf32> to vector<128x128xf32>
    %cst_44 = arith.constant dense<0.000000e+00> : vector<64x128xf32>
    %42 = tpu.matmul %39, %41, %cst_44 {dimension_numbers = #tpu.dot_dimension_numbers<[1], [0], [0], [1], [0, 0, 1, 1], [], []>} : vector<64x128xf32>, vector<128x128xf32>, vector<64x128xf32> -> vector<64x128xf32>
    %43 = arith.addf %37, %42 : vector<64x128xf32>
    %c1_45 = arith.constant 1 : index
    %c2_46 = arith.constant 2 : index
    %c0_47 = arith.constant 0 : index
    %44 = vector.load %arg7[%c1_45, %c2_46, %c0_47] : memref<10x10x128xf32, #tpu.memory_space<vmem>>, vector<8x8x128xf32>
    %45 = vector.shape_cast %44 : vector<8x8x128xf32> to vector<64x128xf32>
    %c5 = arith.constant 5 : index
    %c0_48 = arith.constant 0 : index
    %c0_49 = arith.constant 0 : index
    %46 = vector.load %arg2[%c5, %c0_48, %c0_49] : memref<9x128x128xf32, #tpu.memory_space<vmem>>, vector<1x128x128xf32>
    %47 = vector.shape_cast %46 : vector<1x128x128xf32> to vector<128x128xf32>
    %cst_50 = arith.constant dense<0.000000e+00> : vector<64x128xf32>
    %48 = tpu.matmul %45, %47, %cst_50 {dimension_numbers = #tpu.dot_dimension_numbers<[1], [0], [0], [1], [0, 0, 1, 1], [], []>} : vector<64x128xf32>, vector<128x128xf32>, vector<64x128xf32> -> vector<64x128xf32>
    %49 = arith.addf %43, %48 : vector<64x128xf32>
    %c2_51 = arith.constant 2 : index
    %c0_52 = arith.constant 0 : index
    %c0_53 = arith.constant 0 : index
    %50 = vector.load %arg7[%c2_51, %c0_52, %c0_53] : memref<10x10x128xf32, #tpu.memory_space<vmem>>, vector<8x8x128xf32>
    %51 = vector.shape_cast %50 : vector<8x8x128xf32> to vector<64x128xf32>
    %c6 = arith.constant 6 : index
    %c0_54 = arith.constant 0 : index
    %c0_55 = arith.constant 0 : index
    %52 = vector.load %arg2[%c6, %c0_54, %c0_55] : memref<9x128x128xf32, #tpu.memory_space<vmem>>, vector<1x128x128xf32>
    %53 = vector.shape_cast %52 : vector<1x128x128xf32> to vector<128x128xf32>
    %cst_56 = arith.constant dense<0.000000e+00> : vector<64x128xf32>
    %54 = tpu.matmul %51, %53, %cst_56 {dimension_numbers = #tpu.dot_dimension_numbers<[1], [0], [0], [1], [0, 0, 1, 1], [], []>} : vector<64x128xf32>, vector<128x128xf32>, vector<64x128xf32> -> vector<64x128xf32>
    %55 = arith.addf %49, %54 : vector<64x128xf32>
    %c2_57 = arith.constant 2 : index
    %c1_58 = arith.constant 1 : index
    %c0_59 = arith.constant 0 : index
    %56 = vector.load %arg7[%c2_57, %c1_58, %c0_59] : memref<10x10x128xf32, #tpu.memory_space<vmem>>, vector<8x8x128xf32>
    %57 = vector.shape_cast %56 : vector<8x8x128xf32> to vector<64x128xf32>
    %c7 = arith.constant 7 : index
    %c0_60 = arith.constant 0 : index
    %c0_61 = arith.constant 0 : index
    %58 = vector.load %arg2[%c7, %c0_60, %c0_61] : memref<9x128x128xf32, #tpu.memory_space<vmem>>, vector<1x128x128xf32>
    %59 = vector.shape_cast %58 : vector<1x128x128xf32> to vector<128x128xf32>
    %cst_62 = arith.constant dense<0.000000e+00> : vector<64x128xf32>
    %60 = tpu.matmul %57, %59, %cst_62 {dimension_numbers = #tpu.dot_dimension_numbers<[1], [0], [0], [1], [0, 0, 1, 1], [], []>} : vector<64x128xf32>, vector<128x128xf32>, vector<64x128xf32> -> vector<64x128xf32>
    %61 = arith.addf %55, %60 : vector<64x128xf32>
    %c2_63 = arith.constant 2 : index
    %c2_64 = arith.constant 2 : index
    %c0_65 = arith.constant 0 : index
    %62 = vector.load %arg7[%c2_63, %c2_64, %c0_65] : memref<10x10x128xf32, #tpu.memory_space<vmem>>, vector<8x8x128xf32>
    %63 = vector.shape_cast %62 : vector<8x8x128xf32> to vector<64x128xf32>
    %c8 = arith.constant 8 : index
    %c0_66 = arith.constant 0 : index
    %c0_67 = arith.constant 0 : index
    %64 = vector.load %arg2[%c8, %c0_66, %c0_67] : memref<9x128x128xf32, #tpu.memory_space<vmem>>, vector<1x128x128xf32>
    %65 = vector.shape_cast %64 : vector<1x128x128xf32> to vector<128x128xf32>
    %cst_68 = arith.constant dense<0.000000e+00> : vector<64x128xf32>
    %66 = tpu.matmul %63, %65, %cst_68 {dimension_numbers = #tpu.dot_dimension_numbers<[1], [0], [0], [1], [0, 0, 1, 1], [], []>} : vector<64x128xf32>, vector<128x128xf32>, vector<64x128xf32> -> vector<64x128xf32>
    %67 = arith.addf %61, %66 : vector<64x128xf32>
    %cst_69 = arith.constant dense<0.000000e+00> : vector<128xf32>
    %68 = vector.multi_reduction <add>, %67, %cst_69 [0] : vector<64x128xf32> to vector<128xf32>
    %69 = vector.shape_cast %68 : vector<128xf32> to vector<1x128xf32>
    %c0_70 = arith.constant 0 : index
    %c0_71 = arith.constant 0 : index
    %c0_72 = arith.constant 0 : index
    %70 = vector.load %arg6[%c0_70, %c0_71, %c0_72] : memref<1x2x128xf32, #tpu.memory_space<vmem>>, vector<1x1x128xf32>
    %71 = vector.shape_cast %70 : vector<1x1x128xf32> to vector<1x128xf32>
    %72 = vector.shape_cast %69 : vector<1x128xf32> to vector<1x1x128xf32>
    tpu.vector_store %arg6[%c0_70, %c0_71, %c0_72], %72 {strides = array<i32>} : memref<1x2x128xf32, #tpu.memory_space<vmem>>, vector<1x1x128xf32>,
    %73 = arith.mulf %67, %67 : vector<64x128xf32>
    %cst_73 = arith.constant dense<0.000000e+00> : vector<128xf32>
    %74 = vector.multi_reduction <add>, %73, %cst_73 [0] : vector<64x128xf32> to vector<128xf32>
    %75 = vector.shape_cast %74 : vector<128xf32> to vector<1x128xf32>
    %c0_74 = arith.constant 0 : index
    %c1_75 = arith.constant 1 : index
    %c0_76 = arith.constant 0 : index
    %76 = vector.load %arg6[%c0_74, %c1_75, %c0_76] : memref<1x2x128xf32, #tpu.memory_space<vmem>>, vector<1x1x128xf32>
    %77 = vector.shape_cast %76 : vector<1x1x128xf32> to vector<1x128xf32>
    %78 = vector.shape_cast %75 : vector<1x128xf32> to vector<1x1x128xf32>
    tpu.vector_store %arg6[%c0_74, %c1_75, %c0_76], %78 {strides = array<i32>} : memref<1x2x128xf32, #tpu.memory_space<vmem>>, vector<1x1x128xf32>,
    %79 = vector.shape_cast %67 : vector<64x128xf32> to vector<8x8x128xf32>
    %c0_77 = arith.constant 0 : index
    %c0_78 = arith.constant 0 : index
    %c0_79 = arith.constant 0 : index
    %c0_80 = arith.constant 0 : index
    %80 = vector.load %arg5[%c0_77, %c0_78, %c0_79, %c0_80] : memref<1x8x8x128xf32, #tpu.memory_space<vmem>>, vector<1x8x8x128xf32>
    %81 = vector.shape_cast %80 : vector<1x8x8x128xf32> to vector<8x8x128xf32>
    %82 = vector.shape_cast %79 : vector<8x8x128xf32> to vector<1x8x8x128xf32>
    tpu.vector_store %arg5[%c0_77, %c0_78, %c0_79, %c0_80], %82 {strides = array<i32>} : memref<1x8x8x128xf32, #tpu.memory_space<vmem>>, vector<1x8x8x128xf32>,
    return
  }
  func.func @transform_0(%arg0: i32) -> (i32, i32, i32, i32) {
    %c0_i32 = arith.constant 0 : i32
    %c0_i32_0 = arith.constant 0 : i32
    %c0_i32_1 = arith.constant 0 : i32
    %c0_i32_2 = arith.constant 0 : i32
    return %arg0, %c0_i32, %c0_i32_0, %c0_i32_1 : i32, i32, i32, i32
  }
  func.func @transform_1(%arg0: i32) -> (i32, i32, i32) {
    %c0_i32 = arith.constant 0 : i32
    %c0_i32_0 = arith.constant 0 : i32
    %c0_i32_1 = arith.constant 0 : i32
    %c0_i32_2 = arith.constant 0 : i32
    return %c0_i32, %c0_i32_0, %c0_i32_1 : i32, i32, i32
  }
  func.func @transform_2(%arg0: i32) -> (i32, i32) {
    %c0_i32 = arith.constant 0 : i32
    %c0_i32_0 = arith.constant 0 : i32
    %c0_i32_1 = arith.constant 0 : i32
    return %c0_i32, %c0_i32_0 : i32, i32
  }
  func.func @transform_3(%arg0: i32) -> (i32, i32) {
    %c0_i32 = arith.constant 0 : i32
    %c0_i32_0 = arith.constant 0 : i32
    %c0_i32_1 = arith.constant 0 : i32
    return %c0_i32, %c0_i32_0 : i32, i32
  }
  func.func @transform_4(%arg0: i32) -> (i32, i32, i32, i32) {
    %c0_i32 = arith.constant 0 : i32
    %c0_i32_0 = arith.constant 0 : i32
    %c0_i32_1 = arith.constant 0 : i32
    %c0_i32_2 = arith.constant 0 : i32
    return %arg0, %c0_i32, %c0_i32_0, %c0_i32_1 : i32, i32, i32, i32
  }
  func.func @transform_5(%arg0: i32) -> (i32, i32, i32) {
    %c0_i32 = arith.constant 0 : i32
    %c0_i32_0 = arith.constant 0 : i32
    %c0_i32_1 = arith.constant 0 : i32
    return %arg0, %c0_i32, %c0_i32_0 : i32, i32, i32
  }
}

module attributes {stable_mosaic.version = 11 : i64} {
  func.func @_bn_relu_kernel(%arg0: i32, %arg1: memref<64x128xf32, #tpu.memory_space<vmem>>, %arg2: memref<1x128xf32, #tpu.memory_space<vmem>>, %arg3: memref<1x128xf32, #tpu.memory_space<vmem>>, %arg4: memref<64x128xf32, #tpu.memory_space<vmem>>) attributes {dimension_semantics = [#tpu.dimension_semantics<parallel>], iteration_bounds = array<i64: 2>, scalar_prefetch = 0 : i64, scratch_operands = 0 : i64, tpu.core_type = #tpu.core_type<tc>, window_params = [{transform_indices = @transform_0, window_bounds = array<i64: 64, 128>}, {pipeline_mode = #tpu.pipeline_mode<synchronous>, transform_indices = @transform_1, window_bounds = array<i64: 1, 128>}, {pipeline_mode = #tpu.pipeline_mode<synchronous>, transform_indices = @transform_2, window_bounds = array<i64: 1, 128>}, {transform_indices = @transform_3, window_bounds = array<i64: 64, 128>}]} {
    %c0 = arith.constant 0 : index
    %c0_0 = arith.constant 0 : index
    %0 = vector.load %arg1[%c0, %c0_0] : memref<64x128xf32, #tpu.memory_space<vmem>>, vector<64x128xf32>
    %c0_1 = arith.constant 0 : index
    %c0_2 = arith.constant 0 : index
    %1 = vector.load %arg2[%c0_1, %c0_2] : memref<1x128xf32, #tpu.memory_space<vmem>>, vector<1x128xf32>
    %2 = vector.broadcast %1 : vector<1x128xf32> to vector<64x128xf32>
    %3 = arith.mulf %0, %2 : vector<64x128xf32>
    %c0_3 = arith.constant 0 : index
    %c0_4 = arith.constant 0 : index
    %4 = vector.load %arg3[%c0_3, %c0_4] : memref<1x128xf32, #tpu.memory_space<vmem>>, vector<1x128xf32>
    %5 = vector.broadcast %4 : vector<1x128xf32> to vector<64x128xf32>
    %6 = arith.addf %3, %5 : vector<64x128xf32>
    %cst = arith.constant 0.000000e+00 : f32
    %7 = vector.broadcast %cst : f32 to vector<64x128xf32>
    %8 = arith.maximumf %6, %7 : vector<64x128xf32>
    %c0_5 = arith.constant 0 : index
    %c0_6 = arith.constant 0 : index
    %9 = vector.load %arg4[%c0_5, %c0_6] : memref<64x128xf32, #tpu.memory_space<vmem>>, vector<64x128xf32>
    tpu.vector_store %arg4[%c0_5, %c0_6], %8 {strides = array<i32>} : memref<64x128xf32, #tpu.memory_space<vmem>>, vector<64x128xf32>,
    return
  }
  func.func @transform_0(%arg0: i32) -> (i32, i32) {
    %c0_i32 = arith.constant 0 : i32
    %c0_i32_0 = arith.constant 0 : i32
    return %arg0, %c0_i32 : i32, i32
  }
  func.func @transform_1(%arg0: i32) -> (i32, i32) {
    %c0_i32 = arith.constant 0 : i32
    %c0_i32_0 = arith.constant 0 : i32
    %c0_i32_1 = arith.constant 0 : i32
    return %c0_i32, %c0_i32_0 : i32, i32
  }
  func.func @transform_2(%arg0: i32) -> (i32, i32) {
    %c0_i32 = arith.constant 0 : i32
    %c0_i32_0 = arith.constant 0 : i32
    %c0_i32_1 = arith.constant 0 : i32
    return %c0_i32, %c0_i32_0 : i32, i32
  }
  func.func @transform_3(%arg0: i32) -> (i32, i32) {
    %c0_i32 = arith.constant 0 : i32
    %c0_i32_0 = arith.constant 0 : i32
    return %arg0, %c0_i32 : i32, i32
  }
}

module attributes {stable_mosaic.version = 11 : i64} {
  func.func @_conv3x3_kernel(%arg0: i32, %arg1: memref<1x8x8x128xf32, #tpu.memory_space<vmem>>, %arg2: memref<9x128x128xf32, #tpu.memory_space<vmem>>, %arg3: memref<1x128xf32, #tpu.memory_space<vmem>>, %arg4: memref<1x128xf32, #tpu.memory_space<vmem>>, %arg5: memref<1x8x8x128xf32, #tpu.memory_space<vmem>>, %arg6: memref<1x2x128xf32, #tpu.memory_space<vmem>>, %arg7: memref<10x10x128xf32, #tpu.memory_space<vmem>>) attributes {dimension_semantics = [#tpu.dimension_semantics<parallel>], iteration_bounds = array<i64: 2>, scalar_prefetch = 0 : i64, scratch_operands = 1 : i64, tpu.core_type = #tpu.core_type<tc>, window_params = [{transform_indices = @transform_0, window_bounds = array<i64: 1, 8, 8, 128>}, {pipeline_mode = #tpu.pipeline_mode<synchronous>, transform_indices = @transform_1, window_bounds = array<i64: 9, 128, 128>}, {pipeline_mode = #tpu.pipeline_mode<synchronous>, transform_indices = @transform_2, window_bounds = array<i64: 1, 128>}, {pipeline_mode = #tpu.pipeline_mode<synchronous>, transform_indices = @transform_3, window_bounds = array<i64: 1, 128>}, {transform_indices = @transform_4, window_bounds = array<i64: 1, 8, 8, 128>}, {transform_indices = @transform_5, window_bounds = array<i64: 1, 2, 128>}]} {
    %c0 = arith.constant 0 : index
    %c0_0 = arith.constant 0 : index
    %c0_1 = arith.constant 0 : index
    %c0_2 = arith.constant 0 : index
    %0 = vector.load %arg1[%c0, %c0_0, %c0_1, %c0_2] : memref<1x8x8x128xf32, #tpu.memory_space<vmem>>, vector<1x8x8x128xf32>
    %1 = vector.shape_cast %0 : vector<1x8x8x128xf32> to vector<8x8x128xf32>
    %c0_3 = arith.constant 0 : index
    %c0_4 = arith.constant 0 : index
    %2 = vector.load %arg3[%c0_3, %c0_4] : memref<1x128xf32, #tpu.memory_space<vmem>>, vector<1x128xf32>
    %3 = vector.shape_cast %2 : vector<1x128xf32> to vector<1x1x128xf32>
    %4 = vector.broadcast %3 : vector<1x1x128xf32> to vector<8x8x128xf32>
    %5 = arith.mulf %1, %4 : vector<8x8x128xf32>
    %c0_5 = arith.constant 0 : index
    %c0_6 = arith.constant 0 : index
    %6 = vector.load %arg4[%c0_5, %c0_6] : memref<1x128xf32, #tpu.memory_space<vmem>>, vector<1x128xf32>
    %7 = vector.shape_cast %6 : vector<1x128xf32> to vector<1x1x128xf32>
    %8 = vector.broadcast %7 : vector<1x1x128xf32> to vector<8x8x128xf32>
    %9 = arith.addf %5, %8 : vector<8x8x128xf32>
    %cst = arith.constant 0.000000e+00 : f32
    %10 = vector.broadcast %cst : f32 to vector<8x8x128xf32>
    %11 = arith.maximumf %9, %10 : vector<8x8x128xf32>
    %cst_7 = arith.constant 0.000000e+00 : f32
    %12 = vector.broadcast %cst_7 : f32 to vector<10x10x128xf32>
    %c0_8 = arith.constant 0 : index
    %c0_9 = arith.constant 0 : index
    %c0_10 = arith.constant 0 : index
    %13 = vector.load %arg7[%c0_8, %c0_9, %c0_10] : memref<10x10x128xf32, #tpu.memory_space<vmem>>, vector<10x10x128xf32>
    tpu.vector_store %arg7[%c0_8, %c0_9, %c0_10], %12 {strides = array<i32>} : memref<10x10x128xf32, #tpu.memory_space<vmem>>, vector<10x10x128xf32>,
    %c1 = arith.constant 1 : index
    %c1_11 = arith.constant 1 : index
    %c0_12 = arith.constant 0 : index
    %14 = vector.load %arg7[%c1, %c1_11, %c0_12] : memref<10x10x128xf32, #tpu.memory_space<vmem>>, vector<8x8x128xf32>
    tpu.vector_store %arg7[%c1, %c1_11, %c0_12], %11 {strides = array<i32>} : memref<10x10x128xf32, #tpu.memory_space<vmem>>, vector<8x8x128xf32>,
    %cst_13 = arith.constant 0.000000e+00 : f32
    %15 = vector.broadcast %cst_13 : f32 to vector<64x128xf32>
    %c0_14 = arith.constant 0 : index
    %c0_15 = arith.constant 0 : index
    %c0_16 = arith.constant 0 : index
    %16 = vector.load %arg7[%c0_14, %c0_15, %c0_16] : memref<10x10x128xf32, #tpu.memory_space<vmem>>, vector<8x8x128xf32>
    %17 = vector.shape_cast %16 : vector<8x8x128xf32> to vector<64x128xf32>
    %c0_17 = arith.constant 0 : index
    %c0_18 = arith.constant 0 : index
    %c0_19 = arith.constant 0 : index
    %18 = vector.load %arg2[%c0_17, %c0_18, %c0_19] : memref<9x128x128xf32, #tpu.memory_space<vmem>>, vector<1x128x128xf32>
    %19 = vector.shape_cast %18 : vector<1x128x128xf32> to vector<128x128xf32>
    %cst_20 = arith.constant dense<0.000000e+00> : vector<64x128xf32>
    %20 = tpu.matmul %17, %19, %cst_20 {dimension_numbers = #tpu.dot_dimension_numbers<[1], [0], [0], [1], [0, 0, 1, 1], [], []>} : vector<64x128xf32>, vector<128x128xf32>, vector<64x128xf32> -> vector<64x128xf32>
    %21 = arith.addf %15, %20 : vector<64x128xf32>
    %c0_21 = arith.constant 0 : index
    %c1_22 = arith.constant 1 : index
    %c0_23 = arith.constant 0 : index
    %22 = vector.load %arg7[%c0_21, %c1_22, %c0_23] : memref<10x10x128xf32, #tpu.memory_space<vmem>>, vector<8x8x128xf32>
    %23 = vector.shape_cast %22 : vector<8x8x128xf32> to vector<64x128xf32>
    %c1_24 = arith.constant 1 : index
    %c0_25 = arith.constant 0 : index
    %c0_26 = arith.constant 0 : index
    %24 = vector.load %arg2[%c1_24, %c0_25, %c0_26] : memref<9x128x128xf32, #tpu.memory_space<vmem>>, vector<1x128x128xf32>
    %25 = vector.shape_cast %24 : vector<1x128x128xf32> to vector<128x128xf32>
    %cst_27 = arith.constant dense<0.000000e+00> : vector<64x128xf32>
    %26 = tpu.matmul %23, %25, %cst_27 {dimension_numbers = #tpu.dot_dimension_numbers<[1], [0], [0], [1], [0, 0, 1, 1], [], []>} : vector<64x128xf32>, vector<128x128xf32>, vector<64x128xf32> -> vector<64x128xf32>
    %27 = arith.addf %21, %26 : vector<64x128xf32>
    %c0_28 = arith.constant 0 : index
    %c2 = arith.constant 2 : index
    %c0_29 = arith.constant 0 : index
    %28 = vector.load %arg7[%c0_28, %c2, %c0_29] : memref<10x10x128xf32, #tpu.memory_space<vmem>>, vector<8x8x128xf32>
    %29 = vector.shape_cast %28 : vector<8x8x128xf32> to vector<64x128xf32>
    %c2_30 = arith.constant 2 : index
    %c0_31 = arith.constant 0 : index
    %c0_32 = arith.constant 0 : index
    %30 = vector.load %arg2[%c2_30, %c0_31, %c0_32] : memref<9x128x128xf32, #tpu.memory_space<vmem>>, vector<1x128x128xf32>
    %31 = vector.shape_cast %30 : vector<1x128x128xf32> to vector<128x128xf32>
    %cst_33 = arith.constant dense<0.000000e+00> : vector<64x128xf32>
    %32 = tpu.matmul %29, %31, %cst_33 {dimension_numbers = #tpu.dot_dimension_numbers<[1], [0], [0], [1], [0, 0, 1, 1], [], []>} : vector<64x128xf32>, vector<128x128xf32>, vector<64x128xf32> -> vector<64x128xf32>
    %33 = arith.addf %27, %32 : vector<64x128xf32>
    %c1_34 = arith.constant 1 : index
    %c0_35 = arith.constant 0 : index
    %c0_36 = arith.constant 0 : index
    %34 = vector.load %arg7[%c1_34, %c0_35, %c0_36] : memref<10x10x128xf32, #tpu.memory_space<vmem>>, vector<8x8x128xf32>
    %35 = vector.shape_cast %34 : vector<8x8x128xf32> to vector<64x128xf32>
    %c3 = arith.constant 3 : index
    %c0_37 = arith.constant 0 : index
    %c0_38 = arith.constant 0 : index
    %36 = vector.load %arg2[%c3, %c0_37, %c0_38] : memref<9x128x128xf32, #tpu.memory_space<vmem>>, vector<1x128x128xf32>
    %37 = vector.shape_cast %36 : vector<1x128x128xf32> to vector<128x128xf32>
    %cst_39 = arith.constant dense<0.000000e+00> : vector<64x128xf32>
    %38 = tpu.matmul %35, %37, %cst_39 {dimension_numbers = #tpu.dot_dimension_numbers<[1], [0], [0], [1], [0, 0, 1, 1], [], []>} : vector<64x128xf32>, vector<128x128xf32>, vector<64x128xf32> -> vector<64x128xf32>
    %39 = arith.addf %33, %38 : vector<64x128xf32>
    %c1_40 = arith.constant 1 : index
    %c1_41 = arith.constant 1 : index
    %c0_42 = arith.constant 0 : index
    %40 = vector.load %arg7[%c1_40, %c1_41, %c0_42] : memref<10x10x128xf32, #tpu.memory_space<vmem>>, vector<8x8x128xf32>
    %41 = vector.shape_cast %40 : vector<8x8x128xf32> to vector<64x128xf32>
    %c4 = arith.constant 4 : index
    %c0_43 = arith.constant 0 : index
    %c0_44 = arith.constant 0 : index
    %42 = vector.load %arg2[%c4, %c0_43, %c0_44] : memref<9x128x128xf32, #tpu.memory_space<vmem>>, vector<1x128x128xf32>
    %43 = vector.shape_cast %42 : vector<1x128x128xf32> to vector<128x128xf32>
    %cst_45 = arith.constant dense<0.000000e+00> : vector<64x128xf32>
    %44 = tpu.matmul %41, %43, %cst_45 {dimension_numbers = #tpu.dot_dimension_numbers<[1], [0], [0], [1], [0, 0, 1, 1], [], []>} : vector<64x128xf32>, vector<128x128xf32>, vector<64x128xf32> -> vector<64x128xf32>
    %45 = arith.addf %39, %44 : vector<64x128xf32>
    %c1_46 = arith.constant 1 : index
    %c2_47 = arith.constant 2 : index
    %c0_48 = arith.constant 0 : index
    %46 = vector.load %arg7[%c1_46, %c2_47, %c0_48] : memref<10x10x128xf32, #tpu.memory_space<vmem>>, vector<8x8x128xf32>
    %47 = vector.shape_cast %46 : vector<8x8x128xf32> to vector<64x128xf32>
    %c5 = arith.constant 5 : index
    %c0_49 = arith.constant 0 : index
    %c0_50 = arith.constant 0 : index
    %48 = vector.load %arg2[%c5, %c0_49, %c0_50] : memref<9x128x128xf32, #tpu.memory_space<vmem>>, vector<1x128x128xf32>
    %49 = vector.shape_cast %48 : vector<1x128x128xf32> to vector<128x128xf32>
    %cst_51 = arith.constant dense<0.000000e+00> : vector<64x128xf32>
    %50 = tpu.matmul %47, %49, %cst_51 {dimension_numbers = #tpu.dot_dimension_numbers<[1], [0], [0], [1], [0, 0, 1, 1], [], []>} : vector<64x128xf32>, vector<128x128xf32>, vector<64x128xf32> -> vector<64x128xf32>
    %51 = arith.addf %45, %50 : vector<64x128xf32>
    %c2_52 = arith.constant 2 : index
    %c0_53 = arith.constant 0 : index
    %c0_54 = arith.constant 0 : index
    %52 = vector.load %arg7[%c2_52, %c0_53, %c0_54] : memref<10x10x128xf32, #tpu.memory_space<vmem>>, vector<8x8x128xf32>
    %53 = vector.shape_cast %52 : vector<8x8x128xf32> to vector<64x128xf32>
    %c6 = arith.constant 6 : index
    %c0_55 = arith.constant 0 : index
    %c0_56 = arith.constant 0 : index
    %54 = vector.load %arg2[%c6, %c0_55, %c0_56] : memref<9x128x128xf32, #tpu.memory_space<vmem>>, vector<1x128x128xf32>
    %55 = vector.shape_cast %54 : vector<1x128x128xf32> to vector<128x128xf32>
    %cst_57 = arith.constant dense<0.000000e+00> : vector<64x128xf32>
    %56 = tpu.matmul %53, %55, %cst_57 {dimension_numbers = #tpu.dot_dimension_numbers<[1], [0], [0], [1], [0, 0, 1, 1], [], []>} : vector<64x128xf32>, vector<128x128xf32>, vector<64x128xf32> -> vector<64x128xf32>
    %57 = arith.addf %51, %56 : vector<64x128xf32>
    %c2_58 = arith.constant 2 : index
    %c1_59 = arith.constant 1 : index
    %c0_60 = arith.constant 0 : index
    %58 = vector.load %arg7[%c2_58, %c1_59, %c0_60] : memref<10x10x128xf32, #tpu.memory_space<vmem>>, vector<8x8x128xf32>
    %59 = vector.shape_cast %58 : vector<8x8x128xf32> to vector<64x128xf32>
    %c7 = arith.constant 7 : index
    %c0_61 = arith.constant 0 : index
    %c0_62 = arith.constant 0 : index
    %60 = vector.load %arg2[%c7, %c0_61, %c0_62] : memref<9x128x128xf32, #tpu.memory_space<vmem>>, vector<1x128x128xf32>
    %61 = vector.shape_cast %60 : vector<1x128x128xf32> to vector<128x128xf32>
    %cst_63 = arith.constant dense<0.000000e+00> : vector<64x128xf32>
    %62 = tpu.matmul %59, %61, %cst_63 {dimension_numbers = #tpu.dot_dimension_numbers<[1], [0], [0], [1], [0, 0, 1, 1], [], []>} : vector<64x128xf32>, vector<128x128xf32>, vector<64x128xf32> -> vector<64x128xf32>
    %63 = arith.addf %57, %62 : vector<64x128xf32>
    %c2_64 = arith.constant 2 : index
    %c2_65 = arith.constant 2 : index
    %c0_66 = arith.constant 0 : index
    %64 = vector.load %arg7[%c2_64, %c2_65, %c0_66] : memref<10x10x128xf32, #tpu.memory_space<vmem>>, vector<8x8x128xf32>
    %65 = vector.shape_cast %64 : vector<8x8x128xf32> to vector<64x128xf32>
    %c8 = arith.constant 8 : index
    %c0_67 = arith.constant 0 : index
    %c0_68 = arith.constant 0 : index
    %66 = vector.load %arg2[%c8, %c0_67, %c0_68] : memref<9x128x128xf32, #tpu.memory_space<vmem>>, vector<1x128x128xf32>
    %67 = vector.shape_cast %66 : vector<1x128x128xf32> to vector<128x128xf32>
    %cst_69 = arith.constant dense<0.000000e+00> : vector<64x128xf32>
    %68 = tpu.matmul %65, %67, %cst_69 {dimension_numbers = #tpu.dot_dimension_numbers<[1], [0], [0], [1], [0, 0, 1, 1], [], []>} : vector<64x128xf32>, vector<128x128xf32>, vector<64x128xf32> -> vector<64x128xf32>
    %69 = arith.addf %63, %68 : vector<64x128xf32>
    %cst_70 = arith.constant dense<0.000000e+00> : vector<128xf32>
    %70 = vector.multi_reduction <add>, %69, %cst_70 [0] : vector<64x128xf32> to vector<128xf32>
    %71 = vector.shape_cast %70 : vector<128xf32> to vector<1x128xf32>
    %c0_71 = arith.constant 0 : index
    %c0_72 = arith.constant 0 : index
    %c0_73 = arith.constant 0 : index
    %72 = vector.load %arg6[%c0_71, %c0_72, %c0_73] : memref<1x2x128xf32, #tpu.memory_space<vmem>>, vector<1x1x128xf32>
    %73 = vector.shape_cast %72 : vector<1x1x128xf32> to vector<1x128xf32>
    %74 = vector.shape_cast %71 : vector<1x128xf32> to vector<1x1x128xf32>
    tpu.vector_store %arg6[%c0_71, %c0_72, %c0_73], %74 {strides = array<i32>} : memref<1x2x128xf32, #tpu.memory_space<vmem>>, vector<1x1x128xf32>,
    %75 = arith.mulf %69, %69 : vector<64x128xf32>
    %cst_74 = arith.constant dense<0.000000e+00> : vector<128xf32>
    %76 = vector.multi_reduction <add>, %75, %cst_74 [0] : vector<64x128xf32> to vector<128xf32>
    %77 = vector.shape_cast %76 : vector<128xf32> to vector<1x128xf32>
    %c0_75 = arith.constant 0 : index
    %c1_76 = arith.constant 1 : index
    %c0_77 = arith.constant 0 : index
    %78 = vector.load %arg6[%c0_75, %c1_76, %c0_77] : memref<1x2x128xf32, #tpu.memory_space<vmem>>, vector<1x1x128xf32>
    %79 = vector.shape_cast %78 : vector<1x1x128xf32> to vector<1x128xf32>
    %80 = vector.shape_cast %77 : vector<1x128xf32> to vector<1x1x128xf32>
    tpu.vector_store %arg6[%c0_75, %c1_76, %c0_77], %80 {strides = array<i32>} : memref<1x2x128xf32, #tpu.memory_space<vmem>>, vector<1x1x128xf32>,
    %81 = vector.shape_cast %69 : vector<64x128xf32> to vector<8x8x128xf32>
    %c0_78 = arith.constant 0 : index
    %c0_79 = arith.constant 0 : index
    %c0_80 = arith.constant 0 : index
    %c0_81 = arith.constant 0 : index
    %82 = vector.load %arg5[%c0_78, %c0_79, %c0_80, %c0_81] : memref<1x8x8x128xf32, #tpu.memory_space<vmem>>, vector<1x8x8x128xf32>
    %83 = vector.shape_cast %82 : vector<1x8x8x128xf32> to vector<8x8x128xf32>
    %84 = vector.shape_cast %81 : vector<8x8x128xf32> to vector<1x8x8x128xf32>
    tpu.vector_store %arg5[%c0_78, %c0_79, %c0_80, %c0_81], %84 {strides = array<i32>} : memref<1x8x8x128xf32, #tpu.memory_space<vmem>>, vector<1x8x8x128xf32>,
    return
  }
  func.func @transform_0(%arg0: i32) -> (i32, i32, i32, i32) {
    %c0_i32 = arith.constant 0 : i32
    %c0_i32_0 = arith.constant 0 : i32
    %c0_i32_1 = arith.constant 0 : i32
    %c0_i32_2 = arith.constant 0 : i32
    return %arg0, %c0_i32, %c0_i32_0, %c0_i32_1 : i32, i32, i32, i32
  }
  func.func @transform_1(%arg0: i32) -> (i32, i32, i32) {
    %c0_i32 = arith.constant 0 : i32
    %c0_i32_0 = arith.constant 0 : i32
    %c0_i32_1 = arith.constant 0 : i32
    %c0_i32_2 = arith.constant 0 : i32
    return %c0_i32, %c0_i32_0, %c0_i32_1 : i32, i32, i32
  }
  func.func @transform_2(%arg0: i32) -> (i32, i32) {
    %c0_i32 = arith.constant 0 : i32
    %c0_i32_0 = arith.constant 0 : i32
    %c0_i32_1 = arith.constant 0 : i32
    return %c0_i32, %c0_i32_0 : i32, i32
  }
  func.func @transform_3(%arg0: i32) -> (i32, i32) {
    %c0_i32 = arith.constant 0 : i32
    %c0_i32_0 = arith.constant 0 : i32
    %c0_i32_1 = arith.constant 0 : i32
    return %c0_i32, %c0_i32_0 : i32, i32
  }
  func.func @transform_4(%arg0: i32) -> (i32, i32, i32, i32) {
    %c0_i32 = arith.constant 0 : i32
    %c0_i32_0 = arith.constant 0 : i32
    %c0_i32_1 = arith.constant 0 : i32
    %c0_i32_2 = arith.constant 0 : i32
    return %arg0, %c0_i32, %c0_i32_0, %c0_i32_1 : i32, i32, i32, i32
  }
  func.func @transform_5(%arg0: i32) -> (i32, i32, i32) {
    %c0_i32 = arith.constant 0 : i32
    %c0_i32_0 = arith.constant 0 : i32
    %c0_i32_1 = arith.constant 0 : i32
    return %arg0, %c0_i32, %c0_i32_0 : i32, i32, i32
  }
}

</mosaic_0001>

<bundles_post_ra>
// kernel: down_forward.4
= control target key start
LH: loop header
LB: loop body
LE: loop exit
PB: predicated region body
PF: predicated region fallthrough
CT: control target
= control target key end

     0   :  { %s282_s6 = smov 0   ;;  %s343_s0 = inlined_call_operand.vmem [shape: f32[16,2,8,256], index: 0, kind: input, shape index: {}]   ;;  %s344_s1 = inlined_call_operand.vmem [shape: f32[16,8,128], index: 1, kind: output, shape index: {}]  }
   0x1 LB: > { %s243_s7 = sadd.s32 4294967295, %s270_s6   ;;  %p247_p0 = scmp.ge.s32.totalorder %s270_s6, 1  ;;  %s270_s6 = sphi %s282_s6, %s11_s6  }
   0x2   : > { %p89_p1 = scmp.lt.s32.totalorder %s270_s6, 3 }
   0x4   : > { %p90_p2 = pnand %p247_p0, %p89_p1 }
   0x5   : > { %s248_s8 = sshll.u32 (!%p90_p2), %s243_s7, 3 }
   0x6   : > { %93 = sbr.rel (%p90_p2) target bundleno = 32 (0x20), region = 24  ;;  %p111_p3 = scmp.lt.s32.totalorder (!%p90_p2), %s248_s8, 15 }
   0xd   : > { %s346_s8 = smov (!%p111_p3, %s248_s8), 15 }
   0xe   : > { %s255_s9 = sshll.u32 %s346_s8, 5  ;;  %s252_s13 = sshll.u32 %s346_s8, 3 }
   0xf   : > { %s293_s12 = scalar_lea.vmem %s343_s0, %s255_s9  ;;  %s307_s16 = scalar_lea.vmem %s344_s1, %s252_s13 }
  0x10   : > { %v123_v0 = vld [vmem:[%s293_s12] sm:$0xff]  ;;  %v124_v1 = vld [vmem:[%s293_s12 + $0x8] sm:$0xff]  ;;  %v125_v2 = vld [vmem:[%s293_s12 + $0x10] sm:$0xff] }
  0x11   : > { %v126_v3 = vld [vmem:[%s293_s12 + $0x18] sm:$0xff]  ;;  %v155_v4 = vmax.f32 %v123_v0, %v125_v2  ;;  %v127_v5 = vld [vmem:[%s293_s12 + $0x20] sm:$0xff]  ;;  %v128_v6 = vld [vmem:[%s293_s12 + $0x28] sm:$0xff] }
  0x12   : > { %v156_v7 = vmax.f32 %v124_v1, %v126_v3  ;;  %v129_v8 = vld [vmem:[%s293_s12 + $0x30] sm:$0xff]  ;;  %v130_v9 = vld [vmem:[%s293_s12 + $0x38] sm:$0xff]  ;;  %v131_v10 = vld [vmem:[%s293_s12 + $0x40] sm:$0xff] }
  0x13   : > { %v157_v11 = vmax.f32 %v127_v5, %v129_v8  ;;  %v158_v12 = vmax.f32 %v128_v6, %v130_v9  ;;  %v132_v13 = vld [vmem:[%s293_s12 + $0x48] sm:$0xff]  ;;  %v133_v14 = vld [vmem:[%s293_s12 + $0x50] sm:$0xff]  ;;  %v134_v15 = vld [vmem:[%s293_s12 + $0x58] sm:$0xff] }
  0x14   : > { %v171_v16 = vmax.f32 %v155_v4, %v156_v7  ;;  %v159_v17 = vmax.f32 %v131_v10, %v133_v14  ;;  %v160_v18 = vmax.f32 %v132_v13, %v134_v15  ;;  %v135_v19 = vld [vmem:[%s293_s12 + $0x60] sm:$0xff]  ;;  %v136_v20 = vld [vmem:[%s293_s12 + $0x68] sm:$0xff]  ;;  %v137_v21 = vld [vmem:[%s293_s12 + $0x70] sm:$0xff] }
  0x15   : > { %v172_v22 = vmax.f32 %v157_v11, %v158_v12  ;;  %v138_v23 = vld [vmem:[%s293_s12 + $0x78] sm:$0xff]  ;;  %v161_v24 = vmax.f32 %v135_v19, %v137_v21  ;;  %v139_v25 = vld [vmem:[%s293_s12 + $0x80] sm:$0xff]  ;;  %v140_v26 = vld [vmem:[%s293_s12 + $0x88] sm:$0xff] }
  0x16   : > { %179 = vst [vmem:[%s307_s16] sm:$0xff] %v171_v16  ;;  %v173_v27 = vmax.f32 %v159_v17, %v160_v18  ;;  %v162_v28 = vmax.f32 %v136_v20, %v138_v23  ;;  %v141_v29 = vld [vmem:[%s293_s12 + $0x90] sm:$0xff]  ;;  %v142_v30 = vld [vmem:[%s293_s12 + $0x98] sm:$0xff]  ;;  %v143_v31 = vld [vmem:[%s293_s12 + $0xa0] sm:$0xff] }
  0x17   : > { %180 = vst [vmem:[%s307_s16 + $0x8] sm:$0xff] %v172_v22  ;;  %v163_v32 = vmax.f32 %v139_v25, %v141_v29  ;;  %v164_v33 = vmax.f32 %v140_v26, %v142_v30  ;;  %v144_v34 = vld [vmem:[%s293_s12 + $0xa8] sm:$0xff]  ;;  %v145_v35 = vld [vmem:[%s293_s12 + $0xb0] sm:$0xff]  ;;  %v146_v36 = vld [vmem:[%s293_s12 + $0xb8] sm:$0xff] }
  0x18   : > { %181 = vst [vmem:[%s307_s16 + $0x10] sm:$0xff] %v173_v27  ;;  %v174_v37 = vmax.f32 %v161_v24, %v162_v28  ;;  %v165_v38 = vmax.f32 %v143_v31, %v145_v35  ;;  %v166_v39 = vmax.f32 %v144_v34, %v146_v36  ;;  %v147_v40 = vld [vmem:[%s293_s12 + $0xc0] sm:$0xff]  ;;  %v148_v41 = vld [vmem:[%s293_s12 + $0xc8] sm:$0xff]  ;;  %v149_v42 = vld [vmem:[%s293_s12 + $0xd0] sm:$0xff] }
  0x19   : > { %v175_v43 = vmax.f32 %v163_v32, %v164_v33  ;;  %v150_v44 = vld [vmem:[%s293_s12 + $0xd8] sm:$0xff]  ;;  %v167_v45 = vmax.f32 %v147_v40, %v149_v42  ;;  %v151_v46 = vld [vmem:[%s293_s12 + $0xe0] sm:$0xff]  ;;  %v152_v47 = vld [vmem:[%s293_s12 + $0xe8] sm:$0xff] }
  0x1a   : > { %182 = vst [vmem:[%s307_s16 + $0x18] sm:$0xff] %v174_v37  ;;  %v176_v48 = vmax.f32 %v165_v38, %v166_v39  ;;  %v168_v49 = vmax.f32 %v148_v41, %v150_v44  ;;  %v153_v50 = vld [vmem:[%s293_s12 + $0xf0] sm:$0xff]  ;;  %v154_v51 = vld [vmem:[%s293_s12 + $0xf8] sm:$0xff] }
  0x1b   : > { %183 = vst [vmem:[%s307_s16 + $0x20] sm:$0xff] %v175_v43  ;;  %v169_v52 = vmax.f32 %v151_v46, %v153_v50  ;;  %v170_v53 = vmax.f32 %v152_v47, %v154_v51 }
  0x1c   : > { %184 = vst [vmem:[%s307_s16 + $0x28] sm:$0xff] %v176_v48  ;;  %v177_v54 = vmax.f32 %v167_v45, %v168_v49 }
  0x1d   : > { %v178_v55 = vmax.f32 %v169_v52, %v170_v53 }
  0x1e   : > { %185 = vst [vmem:[%s307_s16 + $0x30] sm:$0xff] %v177_v54 }
  0x1f   : > { %186 = vst [vmem:[%s307_s16 + $0x38] sm:$0xff] %v178_v55 }
  0x20 PF: > { %s11_s6 = sadd.s32 1, %s270_s6  }
  0x21   : > { %p8_p4 = scmp.ge.s32.totalorder %s11_s6, 4  }
  0x23   :  { %10 = sbr.rel (!%p8_p4) target bundleno = 1 (0x1), region = 54 }

// kernel: down_forward.7
= control target key start
LH: loop header
LB: loop body
LE: loop exit
PB: predicated region body
PF: predicated region fallthrough
CT: control target
= control target key end

     0   :  { %s333_s12 = smov 0   ;;  %s356_s0 = inlined_call_operand.vmem [shape: f32[128,128], index: 0, kind: input, shape index: {}]   ;;  %s357_s1 = inlined_call_operand.vmem [shape: f32[1,128], index: 1, kind: input, shape index: {}]   ;;  %s358_s2 = inlined_call_operand.vmem [shape: f32[1,128], index: 2, kind: input, shape index: {}]   ;;  %s359_s3 = inlined_call_operand.vmem [shape: f32[128,128], index: 3, kind: output, shape index: {}]  }
   0x1 LB: > { %s284_s13 = sadd.s32 4294967295, %s311_s12   ;;  %p288_p0 = scmp.ge.s32.totalorder %s311_s12, 1  ;;  %s311_s12 = sphi %s333_s12, %s13_s12  }
   0x2   : > { %p138_p1 = scmp.lt.s32.totalorder %s311_s12, 3 }
   0x4   : > { %p139_p2 = pnand %p288_p0, %p138_p1 }
   0x5   : > { %s289_s14 = sshll.u32 (!%p139_p2), %s284_s13, 3  ;;  %v293_v0 = vld [vmem:[%s357_s1] ss:$0 sm:$0xff] (!%p139_p2) }
   0x6   : > { %142 = sbr.rel (%p139_p2) target bundleno = 27 (0x1b), region = 32  ;;  %p163_p3 = scmp.lt.s32.totalorder (!%p139_p2), %s289_s14, 15  ;;  %v294_v1 = vld [vmem:[%s358_s2] ss:$0 sm:$0xff] (!%p139_p2) }
   0xd   : > { %s361_s14 = smov (!%p163_p3, %s289_s14), 15 }
   0xe   : > { %s290_s15 = sshll.u32 %s361_s14, 3 }
   0xf   : > { %s166_s20 = scalar_lea.vmem %s356_s0, %s290_s15  ;;  %s172_s25 = scalar_lea.vmem %s359_s3, %s290_s15 }
  0x10   : > { %v174_v2 = vld [vmem:[%s166_s20] sm:$0xff]  ;;  %v175_v3 = vld [vmem:[%s166_s20 + $0x8] sm:$0xff]  ;;  %v176_v4 = vld [vmem:[%s166_s20 + $0x10] sm:$0xff] }
  0x11   : > { %v189_v5 = vmul.f32 %v293_v0, %v174_v2  ;;  %v190_v6 = vmul.f32 %v293_v0, %v175_v3  ;;  %v191_v7 = vmul.f32 %v293_v0, %v176_v4  ;;  %v177_v8 = vld [vmem:[%s166_s20 + $0x18] sm:$0xff]  ;;  %v178_v9 = vld [vmem:[%s166_s20 + $0x20] sm:$0xff]  ;;  %v179_v10 = vld [vmem:[%s166_s20 + $0x28] sm:$0xff] }
  0x12   : > { %v192_v11 = vmul.f32 %v293_v0, %v177_v8  ;;  %v193_v12 = vmul.f32 %v293_v0, %v178_v9  ;;  %v194_v13 = vmul.f32 %v293_v0, %v179_v10  ;;  %v180_v14 = vld [vmem:[%s166_s20 + $0x30] sm:$0xff]  ;;  %v181_v15 = vld [vmem:[%s166_s20 + $0x38] sm:$0xff] }
  0x13   : > { %v204_v16 = vadd.f32 %v294_v1, %v189_v5  ;;  %v205_v17 = vadd.f32 %v294_v1, %v190_v6  ;;  %v206_v18 = vadd.f32 %v294_v1, %v191_v7  ;;  %v195_v19 = vmul.f32 %v293_v0, %v180_v14 }
  0x14   : > { %v207_v20 = vadd.f32 %v294_v1, %v192_v11  ;;  %v208_v21 = vadd.f32 %v294_v1, %v193_v12  ;;  %v209_v22 = vadd.f32 %v294_v1, %v194_v13  ;;  %v196_v23 = vmul.f32 %v293_v0, %v181_v15 }
  0x15   : > { %v212_v24 = vmax.f32 %v204_v16, 0.0  ;;  %v213_v25 = vmax.f32 %v205_v17, 0.0  ;;  %v214_v26 = vmax.f32 %v206_v18, 0.0  ;;  %v210_v27 = vadd.f32 %v294_v1, %v195_v19 }
  0x16   : > { %v215_v28 = vmax.f32 %v207_v20, 0.0  ;;  %v216_v29 = vmax.f32 %v208_v21, 0.0  ;;  %v217_v30 = vmax.f32 %v209_v22, 0.0  ;;  %v211_v31 = vadd.f32 %v294_v1, %v196_v23 }
  0x17   : > { %220 = vst [vmem:[%s172_s25] sm:$0xff] %v212_v24  ;;  %221 = vst [vmem:[%s172_s25 + $0x8] sm:$0xff] %v213_v25  ;;  %v218_v32 = vmax.f32 %v210_v27, 0.0 }
  0x18   : > { %222 = vst [vmem:[%s172_s25 + $0x10] sm:$0xff] %v214_v26  ;;  %223 = vst [vmem:[%s172_s25 + $0x18] sm:$0xff] %v215_v28  ;;  %v219_v33 = vmax.f32 %v211_v31, 0.0 }
  0x19   : > { %224 = vst [vmem:[%s172_s25 + $0x20] sm:$0xff] %v216_v29  ;;  %225 = vst [vmem:[%s172_s25 + $0x28] sm:$0xff] %v217_v30 }
  0x1a   : > { %226 = vst [vmem:[%s172_s25 + $0x30] sm:$0xff] %v218_v32  ;;  %227 = vst [vmem:[%s172_s25 + $0x38] sm:$0xff] %v219_v33 }
  0x1b PF: > { %s13_s12 = sadd.s32 1, %s311_s12  }
  0x1c   : > { %p10_p4 = scmp.ge.s32.totalorder %s13_s12, 4  }
  0x1e   :  { %12 = sbr.rel (!%p10_p4) target bundleno = 1 (0x1), region = 62 }

// kernel: down_forward.6
= control target key start
LH: loop header
LB: loop body
LE: loop exit
PB: predicated region body
PF: predicated region fallthrough
CT: control target
= control target key end

     0   :  { %s2839_s18 = smov 0   ;;  %s3479_s0 = inlined_call_operand.vmem [shape: f32[2,8,8,128], index: 0, kind: input, shape index: {}]   ;;  %s3480_s1 = inlined_call_operand.vmem [shape: f32[9,128,128], index: 1, kind: input, shape index: {}]   ;;  %s3481_s2 = inlined_call_operand.vmem [shape: f32[1,128], index: 2, kind: input, shape index: {}]   ;;  %s3482_s3 = inlined_call_operand.vmem [shape: f32[1,128], index: 3, kind: input, shape index: {}]   ;;  %s3483_s4 = inlined_call_operand.vmem [shape: f32[2,8,8,128], index: 4, kind: output, shape index: {0}]   ;;  %s3484_s5 = inlined_call_operand.vmem [shape: f32[2,2,128], index: 5, kind: output, shape index: {1}]  }
   0x1 LB: > { %s1667_s19 = sadd.s32 4294967295, %s2806_s18   ;;  %p1671_p0 = scmp.ge.s32.totalorder %s2806_s18, 1  ;;  %s2806_s18 = sphi %s2839_s18, %s16_s18  }
   0x2   : > { %p190_p1 = scmp.lt.s32.totalorder %s2806_s18, 3 }
   0x4   : > { %p191_p2 = pnand %p1671_p0, %p190_p1 }
   0x5   : > { %v1679_v0 = vld [vmem:[%s3480_s1 + $0x80] sm:$0xff] (!%p191_p2)  ;;  %v1680_v1 = vld [vmem:[%s3480_s1 + $0x88] sm:$0xff] (!%p191_p2)  ;;  %p2858_p3 = scmp.lt.s32.totalorder (!%p191_p2), %s1667_s19, 1  ;;  %v1681_v5 = vld [vmem:[%s3480_s1 + $0x90] sm:$0xff] (!%p191_p2)  ;;  %v2808_v7 = vmov (!%p191_p2), 0.0  }
   0x6   : > { %194 = sbr.rel (%p191_p2) target bundleno = 415 (0x19f), region = 36  ;;  %v1727_v2 = vld [vmem:[%s3480_s1 + $0x200] sm:$0xff] (!%p191_p2)  ;;  %v2423_v3 = vpack.c.bf16 (!%p191_p2), %v1680_v1, %v1679_v0  ;;  %v1728_v4 = vld [vmem:[%s3480_s1 + $0x208] sm:$0xff] (!%p191_p2)  ;;  %v1682_v6 = vld [vmem:[%s3480_s1 + $0x98] sm:$0xff] (!%p191_p2)  ;;  %282 = vst [vmem:[#allocation2] sm:$0xff] (!%p191_p2), %v2808_v7 }
   0x7   : > { %283 = vst [vmem:[#allocation2 + $0x8] sm:$0x3] (!%p191_p2), %v2808_v7  ;;  %284 = vst [vmem:[#allocation2 + $0x10] sm:$0xff] (!%p191_p2), %v2808_v7  ;;  %v2551_v8 = vpack.c.bf16 (!%p191_p2), %v1728_v4, %v1727_v2  ;;  %v2427_v9 = vpack.c.bf16 (!%p191_p2), %v1682_v6, %v1681_v5  ;;  %v1729_v10 = vld [vmem:[%s3480_s1 + $0x210] sm:$0xff] (!%p191_p2)  ;;  %v1730_v11 = vld [vmem:[%s3480_s1 + $0x218] sm:$0xff] (!%p191_p2) }
   0x8   : > { %285 = vst [vmem:[#allocation2 + $0x18] sm:$0x3] (!%p191_p2), %v2808_v7  ;;  %286 = vst [vmem:[#allocation2 + $0x20] sm:$0xff] (!%p191_p2), %v2808_v7  ;;  %v1683_v12 = vld [vmem:[%s3480_s1 + $0xa0] sm:$0xff] (!%p191_p2)  ;;  %2424 = vmatprep.subr.bf16.mxu1 (!%p191_p2), %v2423_v3  ;;  %v2555_v13 = vpack.c.bf16 (!%p191_p2), %v1730_v11, %v1729_v10  ;;  %v1684_v14 = vld [vmem:[%s3480_s1 + $0xa8] sm:$0xff] (!%p191_p2) }
   0x9   : > { %287 = vst [vmem:[#allocation2 + $0x28] sm:$0x3] (!%p191_p2), %v2808_v7  ;;  %288 = vst [vmem:[#allocation2 + $0x30] sm:$0xff] (!%p191_p2), %v2808_v7  ;;  %v1731_v15 = vld [vmem:[%s3480_s1 + $0x220] sm:$0xff] (!%p191_p2)  ;;  %v1732_v16 = vld [vmem:[%s3480_s1 + $0x228] sm:$0xff] (!%p191_p2)  ;;  %2552 = vmatprep.subr.bf16.mxu0 (!%p191_p2), %v2551_v8  ;;  %2426 = vmatpush3.bf16.msra.mxu1 (!%p191_p2), %v2423_v3  ;;  %v2431_v17 = vpack.c.bf16 (!%p191_p2), %v1684_v14, %v1683_v12 }
   0xa   : > { %289 = vst [vmem:[#allocation2 + $0x38] sm:$0x3] (!%p191_p2), %v2808_v7  ;;  %290 = vst [vmem:[#allocation2 + $0x40] sm:$0xff] (!%p191_p2), %v2808_v7  ;;  %2554 = vmatpush3.bf16.msra.mxu0 (!%p191_p2), %v2551_v8  ;;  %2428 = vmatprep.subr.bf16.mxu1 (!%p191_p2), %v2427_v9  ;;  %v2559_v18 = vpack.c.bf16 (!%p191_p2), %v1732_v16, %v1731_v15  ;;  %v1685_v19 = vld [vmem:[%s3480_s1 + $0xb0] sm:$0xff] (!%p191_p2)  ;;  %v1686_v20 = vld [vmem:[%s3480_s1 + $0xb8] sm:$0xff] (!%p191_p2) }
   0xb   : > { %291 = vst [vmem:[#allocation2 + $0x48] sm:$0x3] (!%p191_p2), %v2808_v7  ;;  %292 = vst [vmem:[#allocation2 + $0x50] sm:$0xff] (!%p191_p2), %v2808_v7  ;;  %2556 = vmatprep.subr.bf16.mxu0 (!%p191_p2), %v2555_v13  ;;  %v1733_v21 = vld [vmem:[%s3480_s1 + $0x230] sm:$0xff] (!%p191_p2)  ;;  %v1734_v22 = vld [vmem:[%s3480_s1 + $0x238] sm:$0xff] (!%p191_p2)  ;;  %v2435_v23 = vpack.c.bf16 (!%p191_p2), %v1686_v20, %v1685_v19 }
   0xc   : > { %293 = vst [vmem:[#allocation2 + $0x58] sm:$0x3] (!%p191_p2), %v2808_v7  ;;  %294 = vst [vmem:[#allocation2 + $0x60] sm:$0xff] (!%p191_p2), %v2808_v7  ;;  %v2563_v24 = vpack.c.bf16 (!%p191_p2), %v1734_v22, %v1733_v21  ;;  %v1687_v25 = vld [vmem:[%s3480_s1 + $0xc0] sm:$0xff] (!%p191_p2)  ;;  %v1688_v26 = vld [vmem:[%s3480_s1 + $0xc8] sm:$0xff] (!%p191_p2) }
   0xd   : > { %295 = vst [vmem:[#allocation2 + $0x68] sm:$0x3] %v2808_v7  ;;  %296 = vst [vmem:[#allocation2 + $0x70] sm:$0xff] %v2808_v7  ;;  %s3487_s19 = smov (!%p2858_p3, %s1667_s19), 1  ;;  %2430 = vmatpush3.bf16.msra.mxu1 %v2427_v9  ;;  %v1735_v28 = vld [vmem:[%s3480_s1 + $0x240] sm:$0xff]  ;;  %v1736_v29 = vld [vmem:[%s3480_s1 + $0x248] sm:$0xff]  ;;  %v2439_v33 = vpack.c.bf16 %v1688_v26, %v1687_v25 }
   0xe   : > { %297 = vst [vmem:[#allocation2 + $0x78] sm:$0x3] %v2808_v7  ;;  %298 = vst [vmem:[#allocation2 + $0x80] sm:$0xff] %v2808_v7  ;;  %s1809_s22 = sshll.u32 %s3487_s19, 6  ;;  %2558 = vmatpush3.bf16.msra.mxu0 %v2555_v13  ;;  %2432 = vmatprep.subr.bf16.mxu1 %v2431_v17  ;;  %v335_v27 = vld [vmem:[#allocation2 + $0x1] sm:$0xff]  ;;  %v2567_v36 = vpack.c.bf16 %v1736_v29, %v1735_v28  ;;  %v1689_v37 = vld [vmem:[%s3480_s1 + $0xd0] sm:$0xff] }
   0xf   : > { %299 = vst [vmem:[#allocation2 + $0x88] sm:$0x3] %v2808_v7  ;;  %300 = vst [vmem:[#allocation2 + $0x90] sm:$0xff] %v2808_v7  ;;  %s2933_s8 = scalar_lea.vmem %s3479_s0, %s1809_s22  ;;  %2560 = vmatprep.subr.bf16.mxu0 %v2559_v18  ;;  %2059 = vmatprep.mubr.f32.mxu1 %v335_v27  ;;  %v1677_v31 = vld [vmem:[%s3481_s2] ss:$0 sm:$0xff]  ;;  %v1690_v38 = vld [vmem:[%s3480_s1 + $0xd8] sm:$0xff]  ;;  %s231_s7 = scalar_lea.vmem %s3483_s4, %s1809_s22 }
  0x10   : > { %301 = vst [vmem:[#allocation2 + $0x98] sm:$0x3] %v2808_v7  ;;  %v236_v30 = vld [vmem:[%s2933_s8] sm:$0xff]  ;;  %v237_v35 = vld [vmem:[%s2933_s8 + $0x8] sm:$0xff]  ;;  %v1737_v40 = vld [vmem:[%s3480_s1 + $0x250] sm:$0xff]  ;;  %v2443_v44 = vpack.c.bf16 %v1690_v38, %v1689_v37  ;;  %s1676_s22 = sshll.u32 %s3487_s19, 1 }
  0x11   : > { %2434 = vmatpush3.bf16.msra.mxu1 %v2431_v17  ;;  %v2954_v32 = vld [vmem:[%s3482_s3] ss:$0 sm:$0xff]  ;;  %v251_v34 = vmul.f32 %v1677_v31, %v236_v30  ;;  %v252_v39 = vmul.f32 %v1677_v31, %v237_v35  ;;  %v1738_v41 = vld [vmem:[%s3480_s1 + $0x258] sm:$0xff]  ;;  %v1692_v48 = vld [vmem:[%s3480_s1 + $0xe8] sm:$0xff]  ;;  %s235_s11 = scalar_lea.vmem %s3484_s5, %s1676_s22 }
  0x12   : > { %2562 = vmatpush3.bf16.msra.mxu0 %v2559_v18  ;;  %2436 = vmatprep.subr.bf16.mxu1 %v2435_v23  ;;  %v2571_v46 = vpack.c.bf16 %v1738_v41, %v1737_v40  ;;  %v1691_v47 = vld [vmem:[%s3480_s1 + $0xe0] sm:$0xff]  ;;  %v1740_v51 = vld [vmem:[%s3480_s1 + $0x268] sm:$0xff]  ;;  %v238_v52 = vld [vmem:[%s2933_s8 + $0x10] sm:$0xff] }
  0x13   : > { %2564 = vmatprep.subr.bf16.mxu0 %v2563_v24  ;;  %v266_v42 = vadd.f32 %v2954_v32, %v251_v34  ;;  %v267_v43 = vadd.f32 %v2954_v32, %v252_v39  ;;  %v1739_v50 = vld [vmem:[%s3480_s1 + $0x260] sm:$0xff]  ;;  %v253_v53 = vmul.f32 %v1677_v31, %v238_v52  ;;  %v239_v54 = vld [vmem:[%s2933_s8 + $0x18] sm:$0xff]  ;;  %v2447_v55 = vpack.c.bf16 %v1692_v48, %v1691_v47  ;;  %v1693_v59 = vld [vmem:[%s3480_s1 + $0xf0] sm:$0xff] }
  0x14   : > { %v254_v56 = vmul.f32 %v1677_v31, %v239_v54  ;;  %v240_v57 = vld [vmem:[%s2933_s8 + $0x20] sm:$0xff]  ;;  %v2575_v58 = vpack.c.bf16 %v1740_v51, %v1739_v50  ;;  %v1694_v60 = vld [vmem:[%s3480_s1 + $0xf8] sm:$0xff]  ;;  %v241_v63 = vld [vmem:[%s2933_s8 + $0x28] sm:$0xff] }
  0x15   : > { %2438 = vmatpush3.bf16.msra.mxu1 %v2435_v23  ;;  %v2971_v45 = vmax.f32 %v266_v42, 0.0  ;;  %v2979_v49 = vmax.f32 %v267_v43, 0.0  ;;  %v268_v61 = vadd.f32 %v2954_v32, %v253_v53  ;;  %v255_v62 = vmul.f32 %v1677_v31, %v240_v57  ;;  %v1741_v0 = vld [vmem:[%s3480_s1 + $0x270] sm:$0xff]  ;;  %v1742_v1 = vld [vmem:[%s3480_s1 + $0x278] sm:$0xff]  ;;  %v319_v15 = vld [vmem:[%s3480_s1] sm:$0xff] }
  0x16   : > { %2566 = vmatpush3.bf16.msra.mxu0 %v2563_v24  ;;  %2440 = vmatprep.subr.bf16.mxu1 %v2439_v33  ;;  %v269_v2 = vadd.f32 %v2954_v32, %v254_v56  ;;  %v256_v3 = vmul.f32 %v1677_v31, %v241_v63  ;;  %v242_v4 = vld [vmem:[%s2933_s8 + $0x30] sm:$0xff]  ;;  %v243_v9 = vld [vmem:[%s2933_s8 + $0x38] sm:$0xff]  ;;  %v2451_v10 = vpack.c.bf16 %v1694_v60, %v1693_v59  ;;  %v320_v16 = vld [vmem:[%s3480_s1 + $0x8] sm:$0xff] }
  0x17   : > { %2568 = vmatprep.subr.bf16.mxu0 %v2567_v36  ;;  %303 = vst [vmem:[#allocation2 + $0x11] sm:$0xff] %v2971_v45  ;;  %2235 = vmatprep.mubr.f32.mxu0 %v2971_v45  ;;  %304 = vst [vmem:[#allocation2 + $0x21] sm:$0xff] %v2979_v49  ;;  %v3009_v5 = vmax.f32 %v268_v61, 0.0  ;;  %v270_v6 = vadd.f32 %v2954_v32, %v255_v62  ;;  %v257_v8 = vmul.f32 %v1677_v31, %v242_v4  ;;  %v1743_v19 = vld [vmem:[%s3480_s1 + $0x280] sm:$0xff]  ;;  %v1744_v20 = vld [vmem:[%s3480_s1 + $0x288] sm:$0xff] }
  0x18   : > { %v3013_v11 = vmax.f32 %v269_v2, 0.0  ;;  %v271_v12 = vadd.f32 %v2954_v32, %v256_v3  ;;  %v258_v13 = vmul.f32 %v1677_v31, %v243_v9  ;;  %v2579_v14 = vpack.c.bf16 %v1742_v1, %v1741_v0  ;;  %v321_v27 = vld [vmem:[%s3480_s1 + $0x10] sm:$0xff]  ;;  %v322_v28 = vld [vmem:[%s3480_s1 + $0x18] sm:$0xff]  ;;  %v324_v34 = vld [vmem:[%s3480_s1 + $0x28] sm:$0xff] }
  0x19   : > { %2442 = vmatpush3.bf16.msra.mxu1 %v2439_v33  ;;  %305 = vst [vmem:[#allocation2 + $0x31] sm:$0xff] %v3009_v5  ;;  %v3023_v17 = vmax.f32 %v270_v6, 0.0  ;;  %v272_v18 = vadd.f32 %v2954_v32, %v257_v8  ;;  %v2455_v24 = vpack.c.bf16 %v320_v16, %v319_v15  ;;  %v2583_v26 = vpack.c.bf16 %v1744_v20, %v1743_v19  ;;  %v1745_v29 = vld [vmem:[%s3480_s1 + $0x290] sm:$0xff]  ;;  %v1746_v30 = vld [vmem:[%s3480_s1 + $0x298] sm:$0xff]  ;;  %v323_v33 = vld [vmem:[%s3480_s1 + $0x20] sm:$0xff] }
  0x1a   : > { %2570 = vmatpush3.bf16.msra.mxu0 %v2567_v36  ;;  %2444 = vmatprep.subr.bf16.mxu1 %v2443_v44  ;;  %306 = vst [vmem:[#allocation2 + $0x41] sm:$0xff] %v3013_v11  ;;  %v3033_v21 = vmax.f32 %v271_v12, 0.0  ;;  %v273_v22 = vadd.f32 %v2954_v32, %v258_v13  ;;  %v2459_v31 = vpack.c.bf16 %v322_v28, %v321_v27  ;;  %v1747_v35 = vld [vmem:[%s3480_s1 + $0x2a0] sm:$0xff]  ;;  %v1748_v36 = vld [vmem:[%s3480_s1 + $0x2a8] sm:$0xff]  ;;  %v325_v39 = vld [vmem:[%s3480_s1 + $0x30] sm:$0xff] }
  0x1b   : > { %2572 = vmatprep.subr.bf16.mxu0 %v2571_v46  ;;  %307 = vst [vmem:[#allocation2 + $0x51] sm:$0xff] %v3023_v17  ;;  %v3037_v23 = vmax.f32 %v272_v18, 0.0  ;;  %v2587_v32 = vpack.c.bf16 %v1746_v30, %v1745_v29  ;;  %v2463_v37 = vpack.c.bf16 %v324_v34, %v323_v33  ;;  %v2591_v38 = vpack.c.bf16 %v1748_v36, %v1747_v35  ;;  %v326_v40 = vld [vmem:[%s3480_s1 + $0x38] sm:$0xff]  ;;  %v1749_v41 = vld [vmem:[%s3480_s1 + $0x2b0] sm:$0xff]  ;;  %v1751_v47 = vld [vmem:[%s3480_s1 + $0x2c0] sm:$0xff] }
  0x1c   : > { %308 = vst [vmem:[#allocation2 + $0x61] sm:$0xff] %v3033_v21  ;;  %v3040_v25 = vmax.f32 %v273_v22, 0.0  ;;  %v1750_v42 = vld [vmem:[%s3480_s1 + $0x2b8] sm:$0xff]  ;;  %v2467_v43 = vpack.c.bf16 %v326_v40, %v325_v39  ;;  %v1752_v48 = vld [vmem:[%s3480_s1 + $0x2c8] sm:$0xff]  ;;  %v329_v52 = vld [vmem:[%s3480_s1 + $0x50] sm:$0xff] }
  0x1d   : > { %2446 = vmatpush3.bf16.msra.mxu1 %v2443_v44  ;;  %309 = vst [vmem:[#allocation2 + $0x71] sm:$0xff] %v3037_v23  ;;  %v2595_v44 = vpack.c.bf16 %v1750_v42, %v1749_v41  ;;  %v2599_v51 = vpack.c.bf16 %v1752_v48, %v1751_v47  ;;  %v330_v53 = vld [vmem:[%s3480_s1 + $0x58] sm:$0xff]  ;;  %v1753_v54 = vld [vmem:[%s3480_s1 + $0x2d0] sm:$0xff]  ;;  %v331_v59 = vld [vmem:[%s3480_s1 + $0x60] sm:$0xff] }
  0x1e   : > { %2574 = vmatpush3.bf16.msra.mxu0 %v2571_v46  ;;  %2448 = vmatprep.subr.bf16.mxu1 %v2447_v55  ;;  %310 = vst [vmem:[#allocation2 + $0x81] sm:$0xff] %v3040_v25  ;;  %v328_v46 = vld [vmem:[%s3480_s1 + $0x48] sm:$0xff]  ;;  %v3118_v56 = vld [vmem:[#allocation2 + $0x12] sm:$0xff]  ;;  %v2475_v57 = vpack.c.bf16 %v330_v53, %v329_v52  ;;  %v1755_v61 = vld [vmem:[%s3480_s1 + $0x2e0] sm:$0xff] }
  0x1f   : > { %2576 = vmatprep.subr.bf16.mxu0 %v2575_v58  ;;  %v332_v60 = vld [vmem:[%s3480_s1 + $0x68] sm:$0xff]  ;;  %v333_v1 = vld [vmem:[%s3480_s1 + $0x70] sm:$0xff]  ;;  %v334_v2 = vld [vmem:[%s3480_s1 + $0x78] sm:$0xff] }
  0x20   : > { %v1756_v62 = vld [vmem:[%s3480_s1 + $0x2e8] sm:$0xff]  ;;  %v2479_v63 = vpack.c.bf16 %v332_v60, %v331_v59  ;;  %v1757_v3 = vld [vmem:[%s3480_s1 + $0x2f0] sm:$0xff]  ;;  %v1758_v4 = vld [vmem:[%s3480_s1 + $0x2f8] sm:$0xff]  ;;  %v2483_v6 = vpack.c.bf16 %v334_v2, %v333_v1 }
  0x21   : > { %2450 = vmatpush3.bf16.msra.mxu1 %v2447_v55  ;;  %v1754_v55 = vld [vmem:[%s3480_s1 + $0x2d8] sm:$0xff]  ;;  %v2607_v0 = vpack.c.bf16 %v1756_v62, %v1755_v61  ;;  %v2611_v8 = vpack.c.bf16 %v1758_v4, %v1757_v3  ;;  %v1695_v9 = vld [vmem:[%s3480_s1 + $0x100] sm:$0xff]  ;;  %v1760_v13 = vld [vmem:[%s3480_s1 + $0x308] sm:$0xff] }
  0x22   : > { %2578 = vmatpush3.bf16.msra.mxu0 %v2575_v58  ;;  %2452 = vmatprep.subr.bf16.mxu1 %v2451_v10  ;;  %v2603_v58 = vpack.c.bf16 %v1754_v55, %v1753_v54  ;;  %v1759_v12 = vld [vmem:[%s3480_s1 + $0x300] sm:$0xff]  ;;  %v1697_v16 = vld [vmem:[%s3480_s1 + $0x110] sm:$0xff]  ;;  %v1698_v18 = vld [vmem:[%s3480_s1 + $0x118] sm:$0xff] }
  0x23   : > { %2580 = vmatprep.subr.bf16.mxu0 %v2579_v14  ;;  %v2615_v15 = vpack.c.bf16 %v1760_v13, %v1759_v12  ;;  %v1761_v19 = vld [vmem:[%s3480_s1 + $0x310] sm:$0xff]  ;;  %v1762_v20 = vld [vmem:[%s3480_s1 + $0x318] sm:$0xff]  ;;  %v1699_v28 = vld [vmem:[%s3480_s1 + $0x120] sm:$0xff] }
  0x24   : > { %v3170_v22 = vld [vmem:[#allocation2 + $0x10] sm:$0xff]  ;;  %v2619_v27 = vpack.c.bf16 %v1762_v20, %v1761_v19  ;;  %v1700_v29 = vld [vmem:[%s3480_s1 + $0x128] sm:$0xff]  ;;  %v1763_v30 = vld [vmem:[%s3480_s1 + $0x320] sm:$0xff] }
  0x25   : > { %2454 = vmatpush3.bf16.msra.mxu1 %v2451_v10  ;;  %v1696_v10 = vld [vmem:[%s3480_s1 + $0x108] sm:$0xff]  ;;  %v3190_v33 = vld [vmem:[#allocation2 + $0x32] sm:$0xff]  ;;  %v2495_v35 = vpack.c.bf16 %v1700_v29, %v1699_v28  ;;  %v3211_v42 = vld [vmem:[#allocation2 + $0x40] sm:$0xff] }
  0x26   : > { %2582 = vmatpush3.bf16.msra.mxu0 %v2579_v14  ;;  %2456 = vmatprep.subr.bf16.mxu1 %v2455_v24  ;;  %v2487_v14 = vpack.c.bf16 %v1696_v10, %v1695_v9  ;;  %v3192_v34 = vld [vmem:[#allocation2 + $0x30] sm:$0xff]  ;;  %v3194_v36 = vld [vmem:[#allocation2 + $0x42] sm:$0xff]  ;;  %v1702_v39 = vld [vmem:[%s3480_s1 + $0x138] sm:$0xff] }
  0x27   : > { %2584 = vmatprep.subr.bf16.mxu0 %v2583_v26  ;;  %v1765_v40 = vld [vmem:[%s3480_s1 + $0x330] sm:$0xff]  ;;  %v1766_v41 = vld [vmem:[%s3480_s1 + $0x338] sm:$0xff]  ;;  %v1703_v48 = vld [vmem:[%s3480_s1 + $0x140] sm:$0xff] }
  0x28   : > { %2060 = vmatmul.mubr.f32.vlgmr.msra.gmra.mrb[0].mxu1 %v2971_v45  ;;  %v327_v45 = vld [vmem:[%s3480_s1 + $0x40] sm:$0xff]  ;;  %v2627_v47 = vpack.c.bf16 %v1766_v41, %v1765_v40  ;;  %v1768_v52 = vld [vmem:[%s3480_s1 + $0x348] sm:$0xff]  ;;  %v3238_v54 = vld [vmem:[#allocation2 + $0x72] sm:$0xff] }
  0x29   : > { %2458 = vmatpush3.bf16.msra.mxu1 %v2455_v24  ;;  %2236 = vmatmul.mubr.f32.vlgmr.msra.gmra.mrb[0].mxu0 %v2979_v49  ;;  %v2471_v50 = vpack.c.bf16 %v328_v46, %v327_v45  ;;  %v3172_v24 = vld [vmem:[#allocation2 + $0x22] sm:$0xff]  ;;  %v3240_v55 = vld [vmem:[#allocation2 + $0x70] sm:$0xff]  ;;  %v1706_v61 = vld [vmem:[%s3480_s1 + $0x158] sm:$0xff] }
  0x2a   : > { %2586 = vmatpush3.bf16.msra.mxu0 %v2583_v26  ;;  %2460 = vmatprep.subr.bf16.mxu1 %v2459_v31  ;;  %v2491_v26 = vpack.c.bf16 %v1698_v18, %v1697_v16  ;;  %v3218_v46 = vld [vmem:[#allocation2 + $0x62] sm:$0xff]  ;;  %v1705_v60 = vld [vmem:[%s3480_s1 + $0x150] sm:$0xff]  ;;  %v1710_v13 = vld [vmem:[%s3480_s1 + $0x178] sm:$0xff] }
  0x2b   : > { %2588 = vmatprep.subr.bf16.mxu0 %v2587_v32  ;;  %2062 = vmatprep.mubr.f32.mxu1 %v2979_v49  ;;  %v3235_v53 = vld [vmem:[#allocation2 + $0x60] sm:$0xff]  ;;  %v1769_v62 = vld [vmem:[%s3480_s1 + $0x350] sm:$0xff]  ;;  %v2507_v1 = vpack.c.bf16 %v1706_v61, %v1705_v60  ;;  %v1708_v4 = vld [vmem:[%s3480_s1 + $0x168] sm:$0xff] }
  0x2c   : > { %2238 = vmatprep.mubr.f32.mxu0 %v3009_v5  ;;  %2063 = vmatmul.mubr.f32.gmra.mrb[2].mxu1 %v3009_v5  ;;  %v1707_v3 = vld [vmem:[%s3480_s1 + $0x160] sm:$0xff]  ;;  %v1709_v12 = vld [vmem:[%s3480_s1 + $0x170] sm:$0xff]  ;;  %v1712_v20 = vld [vmem:[%s3480_s1 + $0x188] sm:$0xff] }
  0x2d   : > { %2462 = vmatpush3.bf16.msra.mxu1 %v2459_v31  ;;  %2239 = vmatmul.mubr.f32.gmra.mrb[2].mxu0 %v3013_v11  ;;  %v1764_v31 = vld [vmem:[%s3480_s1 + $0x328] sm:$0xff]  ;;  %v2511_v9 = vpack.c.bf16 %v1708_v4, %v1707_v3  ;;  %v2515_v16 = vpack.c.bf16 %v1710_v13, %v1709_v12  ;;  %v1711_v19 = vld [vmem:[%s3480_s1 + $0x180] sm:$0xff]  ;;  %v1721_v4 = vld [vmem:[%s3480_s1 + $0x1d0] sm:$0xff] }
  0x2e   : > { %2590 = vmatpush3.bf16.msra.mxu0 %v2587_v32  ;;  %2464 = vmatprep.subr.bf16.mxu1 %v2463_v37  ;;  %v3187_v32 = vld [vmem:[#allocation2 + $0x20] sm:$0xff]  ;;  %v2519_v28 = vpack.c.bf16 %v1712_v20, %v1711_v19  ;;  %v1716_v41 = vld [vmem:[%s3480_s1 + $0x1a8] sm:$0xff]  ;;  %v1726_v19 = vld [vmem:[%s3480_s1 + $0x1f8] sm:$0xff] }
  0x2f   : > { %2592 = vmatprep.subr.bf16.mxu0 %v2591_v38  ;;  %2065 = vmatprep.mubr.f32.mxu1 %v3013_v11  ;;  %v1715_v40 = vld [vmem:[%s3480_s1 + $0x1a0] sm:$0xff]  ;;  %v1789_v20 = vld [vmem:[%s3480_s1 + $0x3f0] sm:$0xff] }
  0x30   : > { %2241 = vmatprep.mubr.f32.mxu0 %v3023_v17  ;;  %2066 = vmatmul.mubr.f32.gmra.mrb[4].mxu1 %v3023_v17  ;;  %v1719_v61 = vld [vmem:[%s3480_s1 + $0x1c0] sm:$0xff] }
  0x31   : > { %2466 = vmatpush3.bf16.msra.mxu1 %v2463_v37  ;;  %2242 = vmatmul.mubr.f32.gmra.mrb[4].mxu0 %v3033_v21  ;;  %v2623_v37 = vpack.c.bf16 %v1764_v31, %v1763_v30  ;;  %v1713_v30 = vld [vmem:[%s3480_s1 + $0x190] sm:$0xff]  ;;  %v1714_v31 = vld [vmem:[%s3480_s1 + $0x198] sm:$0xff]  ;;  %v1723_v13 = vld [vmem:[%s3480_s1 + $0x1e0] sm:$0xff] }
  0x32   : > { %2594 = vmatpush3.bf16.msra.mxu0 %v2591_v38  ;;  %2468 = vmatprep.subr.bf16.mxu1 %v2467_v43  ;;  %v1701_v38 = vld [vmem:[%s3480_s1 + $0x130] sm:$0xff] }
  0x33   : > { %2596 = vmatprep.subr.bf16.mxu0 %v2595_v44  ;;  %2068 = vmatprep.mubr.f32.mxu1 %v3033_v21  ;;  %v2499_v45 = vpack.c.bf16 %v1702_v39, %v1701_v38  ;;  %v2523_v38 = vpack.c.bf16 %v1714_v31, %v1713_v30  ;;  %v1793_v31 = vld [vmem:[%s3480_s1 + $0x410] sm:$0xff] }
  0x34   : > { %2244 = vmatprep.mubr.f32.mxu0 %v3037_v23  ;;  %2069 = vmatmul.mubr.f32.gmra.mrb[6].mxu1 %v3037_v23 }
  0x35   : > { %2470 = vmatpush3.bf16.msra.mxu1 %v2467_v43  ;;  %2245 = vmatmul.mubr.f32.gmra.mrb[6].mxu0 %v3040_v25  ;;  %v3214_v43 = vld [vmem:[#allocation2 + $0x52] sm:$0xff] }
  0x36   : > { %2598 = vmatpush3.bf16.msra.mxu0 %v2595_v44  ;;  %2472 = vmatprep.subr.bf16.mxu1 %v2471_v50  ;;  %v3216_v44 = vld [vmem:[#allocation2 + $0x50] sm:$0xff] }
  0x37   : > { %2600 = vmatprep.subr.bf16.mxu0 %v2599_v51  ;;  %2103 = vmatprep.mubr.f32.mxu1 %v2808_v7 }
  0x38   : > { %2279 = vmatprep.mubr.f32.mxu0 %v3118_v56 }
  0x39   : > { %2474 = vmatpush3.bf16.msra.mxu1 %v2471_v50  ;;  %v1704_v50 = vld [vmem:[%s3480_s1 + $0x148] sm:$0xff] }
  0x3a   : > { %2602 = vmatpush3.bf16.msra.mxu0 %v2599_v51  ;;  %2476 = vmatprep.subr.bf16.mxu1 %v2475_v57  ;;  %v1767_v51 = vld [vmem:[%s3480_s1 + $0x340] sm:$0xff] }
  0x3b   : > { %2604 = vmatprep.subr.bf16.mxu0 %v2603_v58  ;;  %v2631_v59 = vpack.c.bf16 %v1768_v52, %v1767_v51  ;;  %v1718_v51 = vld [vmem:[%s3480_s1 + $0x1b8] sm:$0xff]  ;;  %v1781_v52 = vld [vmem:[%s3480_s1 + $0x3b0] sm:$0xff] }
  0x3d   : > { %2478 = vmatpush3.bf16.msra.mxu1 %v2475_v57  ;;  %v2503_v57 = vpack.c.bf16 %v1704_v50, %v1703_v48  ;;  %v2527_v48 = vpack.c.bf16 %v1716_v41, %v1715_v40  ;;  %v1798_v41 = vld [vmem:[%s3480_s1 + $0x438] sm:$0xff] }
  0x3e   : > { %2606 = vmatpush3.bf16.msra.mxu0 %v2603_v58  ;;  %2480 = vmatprep.subr.bf16.mxu1 %v2479_v63  ;;  %v3242_v58 = vld [vmem:[#allocation2 + $0x82] sm:$0xff] }
  0x3f   : > { %2608 = vmatprep.subr.bf16.mxu0 %v2607_v0 }
  0x41   : > { %2482 = vmatpush3.bf16.msra.mxu1 %v2479_v63  ;;  %v1770_v63 = vld [vmem:[%s3480_s1 + $0x358] sm:$0xff] }
  0x42   : > { %2610 = vmatpush3.bf16.msra.mxu0 %v2607_v0  ;;  %2484 = vmatprep.subr.bf16.mxu1 %v2483_v6  ;;  %v570_v0 = vld [vmem:[#allocation2 + $0x2] sm:$0xff]  ;;  %v2635_v2 = vpack.c.bf16 %v1770_v63, %v1769_v62 }
  0x43   : > { %2612 = vmatprep.subr.bf16.mxu0 %v2611_v8  ;;  %v1720_v62 = vld [vmem:[%s3480_s1 + $0x1c8] sm:$0xff]  ;;  %v1783_v63 = vld [vmem:[%s3480_s1 + $0x3c0] sm:$0xff] }
  0x45   : > { %2486 = vmatpush3.bf16.msra.mxu1 %v2483_v6  ;;  %v1771_v6 = vld [vmem:[%s3480_s1 + $0x360] sm:$0xff] }
  0x46   : > { %2614 = vmatpush3.bf16.msra.mxu0 %v2611_v8  ;;  %2488 = vmatprep.subr.bf16.mxu1 %v2487_v14  ;;  %v1772_v8 = vld [vmem:[%s3480_s1 + $0x368] sm:$0xff] }
  0x47   : > { %2616 = vmatprep.subr.bf16.mxu0 %v2615_v15  ;;  %v2639_v10 = vpack.c.bf16 %v1772_v8, %v1771_v6  ;;  %v1722_v6 = vld [vmem:[%s3480_s1 + $0x1d8] sm:$0xff]  ;;  %v1785_v8 = vld [vmem:[%s3480_s1 + $0x3d0] sm:$0xff] }
  0x48   : > { %2104 = vmatmul.mubr.f32.vlgmr.msra.gmra.mrb[0].mxu1 %v3170_v22 }
  0x49   : > { %2490 = vmatpush3.bf16.msra.mxu1 %v2487_v14  ;;  %2280 = vmatmul.mubr.f32.vlgmr.msra.gmra.mrb[0].mxu0 %v3172_v24  ;;  %v1773_v14 = vld [vmem:[%s3480_s1 + $0x370] sm:$0xff] }
  0x4a   : > { %2618 = vmatpush3.bf16.msra.mxu0 %v2615_v15  ;;  %2492 = vmatprep.subr.bf16.mxu1 %v2491_v26  ;;  %v1774_v15 = vld [vmem:[%s3480_s1 + $0x378] sm:$0xff] }
  0x4b   : > { %2620 = vmatprep.subr.bf16.mxu0 %v2619_v27  ;;  %2106 = vmatprep.mubr.f32.mxu1 %v3187_v32  ;;  %v2643_v18 = vpack.c.bf16 %v1774_v15, %v1773_v14  ;;  %v1724_v14 = vld [vmem:[%s3480_s1 + $0x1e8] sm:$0xff]  ;;  %v1787_v15 = vld [vmem:[%s3480_s1 + $0x3e0] sm:$0xff] }
  0x4c   : > { %2282 = vmatprep.mubr.f32.mxu0 %v3190_v33  ;;  %2107 = vmatmul.mubr.f32.gmra.mrb[2].mxu1 %v3192_v34 }
  0x4d   : > { %2494 = vmatpush3.bf16.msra.mxu1 %v2491_v26  ;;  %2283 = vmatmul.mubr.f32.gmra.mrb[2].mxu0 %v3194_v36  ;;  %v1775_v26 = vld [vmem:[%s3480_s1 + $0x380] sm:$0xff] }
  0x4e   : > { %2622 = vmatpush3.bf16.msra.mxu0 %v2619_v27  ;;  %2496 = vmatprep.subr.bf16.mxu1 %v2495_v35  ;;  %v1776_v27 = vld [vmem:[%s3480_s1 + $0x388] sm:$0xff] }
  0x4f   : > { %2624 = vmatprep.subr.bf16.mxu0 %v2623_v37  ;;  %2109 = vmatprep.mubr.f32.mxu1 %v3211_v42  ;;  %v2647_v29 = vpack.c.bf16 %v1776_v27, %v1775_v26 }
  0x50   : > { %2285 = vmatprep.mubr.f32.mxu0 %v3214_v43  ;;  %2110 = vmatmul.mubr.f32.gmra.mrb[4].mxu1 %v3216_v44 }
  0x51   : > { %2498 = vmatpush3.bf16.msra.mxu1 %v2495_v35  ;;  %2286 = vmatmul.mubr.f32.gmra.mrb[4].mxu0 %v3218_v46  ;;  %v1777_v35 = vld [vmem:[%s3480_s1 + $0x390] sm:$0xff] }
  0x52   : > { %2626 = vmatpush3.bf16.msra.mxu0 %v2623_v37  ;;  %2500 = vmatprep.subr.bf16.mxu1 %v2499_v45  ;;  %v1778_v37 = vld [vmem:[%s3480_s1 + $0x398] sm:$0xff] }
  0x53   : > { %2628 = vmatprep.subr.bf16.mxu0 %v2627_v47  ;;  %2112 = vmatprep.mubr.f32.mxu1 %v3235_v53  ;;  %v2651_v39 = vpack.c.bf16 %v1778_v37, %v1777_v35  ;;  %v1794_v35 = vld [vmem:[%s3480_s1 + $0x418] sm:$0xff] }
  0x54   : > { %2288 = vmatprep.mubr.f32.mxu0 %v3238_v54  ;;  %2113 = vmatmul.mubr.f32.gmra.mrb[6].mxu1 %v3240_v55  ;;  %v2683_v37 = vpack.c.bf16 %v1794_v35, %v1793_v31 }
  0x55   : > { %2502 = vmatpush3.bf16.msra.mxu1 %v2499_v45  ;;  %2289 = vmatmul.mubr.f32.gmra.mrb[6].mxu0 %v3242_v58  ;;  %v1779_v45 = vld [vmem:[%s3480_s1 + $0x3a0] sm:$0xff] }
  0x56   : > { %2630 = vmatpush3.bf16.msra.mxu0 %v2627_v47  ;;  %2504 = vmatprep.subr.bf16.mxu1 %v2503_v57  ;;  %v1780_v47 = vld [vmem:[%s3480_s1 + $0x3a8] sm:$0xff] }
  0x57   : > { %2632 = vmatprep.subr.bf16.mxu0 %v2631_v59  ;;  %2147 = vmatprep.mubr.f32.mxu1 %v570_v0  ;;  %v2655_v50 = vpack.c.bf16 %v1780_v47, %v1779_v45  ;;  %v1784_v0 = vld [vmem:[%s3480_s1 + $0x3c8] sm:$0xff]  ;;  %v1805_v45 = vld [vmem:[%s3480_s1 + $0x470] sm:$0xff]  ;;  %v1806_v47 = vld [vmem:[%s3480_s1 + $0x478] sm:$0xff] }
  0x58   : > { %2323 = vmatprep.mubr.f32.mxu0 %v3187_v32  ;;  %v2663_v3 = vpack.c.bf16 %v1784_v0, %v1783_v63 }
  0x59   : > { %2506 = vmatpush3.bf16.msra.mxu1 %v2503_v57  ;;  %v1782_v57 = vld [vmem:[%s3480_s1 + $0x3b8] sm:$0xff] }
  0x5a   : > { %2634 = vmatpush3.bf16.msra.mxu0 %v2631_v59  ;;  %2508 = vmatprep.subr.bf16.mxu1 %v2507_v1  ;;  %v2659_v60 = vpack.c.bf16 %v1782_v57, %v1781_v52 }
  0x5b   : > { %2636 = vmatprep.subr.bf16.mxu0 %v2635_v2 }
  0x5d   : > { %2510 = vmatpush3.bf16.msra.mxu1 %v2507_v1  ;;  %v3355_v1 = vld [vmem:[#allocation2 + $0x80] sm:$0xff] }
  0x5e   : > { %2638 = vmatpush3.bf16.msra.mxu0 %v2635_v2  ;;  %2512 = vmatprep.subr.bf16.mxu1 %v2511_v9  ;;  %v2535_v2 = vpack.c.bf16 %v1720_v62, %v1719_v61 }
  0x5f   : > { %2640 = vmatprep.subr.bf16.mxu0 %v2639_v10 }
  0x61   : > { %2514 = vmatpush3.bf16.msra.mxu1 %v2511_v9  ;;  %v1786_v9 = vld [vmem:[%s3480_s1 + $0x3d8] sm:$0xff] }
  0x62   : > { %2642 = vmatpush3.bf16.msra.mxu0 %v2639_v10  ;;  %2516 = vmatprep.subr.bf16.mxu1 %v2515_v16  ;;  %v2539_v10 = vpack.c.bf16 %v1722_v6, %v1721_v4  ;;  %v2667_v12 = vpack.c.bf16 %v1786_v9, %v1785_v8 }
  0x63   : > { %2644 = vmatprep.subr.bf16.mxu0 %v2643_v18 }
  0x65   : > { %2518 = vmatpush3.bf16.msra.mxu1 %v2515_v16  ;;  %v2543_v16 = vpack.c.bf16 %v1724_v14, %v1723_v13 }
  0x66   : > { %2646 = vmatpush3.bf16.msra.mxu0 %v2643_v18  ;;  %2520 = vmatprep.subr.bf16.mxu1 %v2519_v28 }
  0x67   : > { %2648 = vmatprep.subr.bf16.mxu0 %v2647_v29 }
  0x68   : > { %2148 = vmatmul.mubr.f32.vlgmr.msra.gmra.mrb[0].mxu1 %v3118_v56  ;;  %v1717_v56 = vld [vmem:[%s3480_s1 + $0x1b0] sm:$0xff] }
  0x69   : > { %2522 = vmatpush3.bf16.msra.mxu1 %v2519_v28  ;;  %2324 = vmatmul.mubr.f32.vlgmr.msra.gmra.mrb[0].mxu0 %v3192_v34  ;;  %v2531_v59 = vpack.c.bf16 %v1718_v51, %v1717_v56  ;;  %v1791_v28 = vld [vmem:[%s3480_s1 + $0x400] sm:$0xff] }
  0x6a   : > { %2650 = vmatpush3.bf16.msra.mxu0 %v2647_v29  ;;  %2524 = vmatprep.subr.bf16.mxu1 %v2523_v38  ;;  %v1792_v29 = vld [vmem:[%s3480_s1 + $0x408] sm:$0xff] }
  0x6b   : > { %2652 = vmatprep.subr.bf16.mxu0 %v2651_v39  ;;  %2150 = vmatprep.mubr.f32.mxu1 %v3172_v24  ;;  %v2679_v30 = vpack.c.bf16 %v1792_v29, %v1791_v28 }
  0x6c   : > { %2326 = vmatprep.mubr.f32.mxu0 %v3211_v42  ;;  %2151 = vmatmul.mubr.f32.gmra.mrb[2].mxu1 %v3190_v33 }
  0x6d   : > { %2526 = vmatpush3.bf16.msra.mxu1 %v2523_v38  ;;  %2327 = vmatmul.mubr.f32.gmra.mrb[2].mxu0 %v3216_v44  ;;  %v1795_v38 = vld [vmem:[%s3480_s1 + $0x420] sm:$0xff] }
  0x6e   : > { %2654 = vmatpush3.bf16.msra.mxu0 %v2651_v39  ;;  %2528 = vmatprep.subr.bf16.mxu1 %v2527_v48  ;;  %v1796_v39 = vld [vmem:[%s3480_s1 + $0x428] sm:$0xff] }
  0x6f   : > { %2656 = vmatprep.subr.bf16.mxu0 %v2655_v50  ;;  %2153 = vmatprep.mubr.f32.mxu1 %v3194_v36  ;;  %v2687_v40 = vpack.c.bf16 %v1796_v39, %v1795_v38 }
  0x70   : > { %2329 = vmatprep.mubr.f32.mxu0 %v3235_v53  ;;  %2154 = vmatmul.mubr.f32.gmra.mrb[4].mxu1 %v3214_v43 }
  0x71   : > { %2530 = vmatpush3.bf16.msra.mxu1 %v2527_v48  ;;  %2330 = vmatmul.mubr.f32.gmra.mrb[4].mxu0 %v3240_v55  ;;  %v2707_v48 = vpack.c.bf16 %v1806_v47, %v1805_v45 }
  0x72   : > { %2658 = vmatpush3.bf16.msra.mxu0 %v2655_v50  ;;  %2532 = vmatprep.subr.bf16.mxu1 %v2531_v59 }
  0x73   : > { %2660 = vmatprep.subr.bf16.mxu0 %v2659_v60  ;;  %2156 = vmatprep.mubr.f32.mxu1 %v3218_v46 }
  0x74   : > { %2332 = vmatprep.mubr.f32.mxu0 %v3355_v1  ;;  %2157 = vmatmul.mubr.f32.gmra.mrb[6].mxu1 %v3238_v54 }
  0x75   : > { %2534 = vmatpush3.bf16.msra.mxu1 %v2531_v59  ;;  %2333 = vmatmul.mubr.f32.gmra.mrb[6].mxu0 %v2808_v7  ;;  %v1788_v7 = vld [vmem:[%s3480_s1 + $0x3e8] sm:$0xff] }
  0x76   : > { %2662 = vmatpush3.bf16.msra.mxu0 %v2659_v60  ;;  %2536 = vmatprep.subr.bf16.mxu1 %v2535_v2  ;;  %v2671_v18 = vpack.c.bf16 %v1788_v7, %v1787_v15 }
  0x77   : > { %2664 = vmatprep.subr.bf16.mxu0 %v2663_v3  ;;  %2191 = vmatprep.mubr.f32.mxu1 %v3170_v22  ;;  %v1725_v22 = vld [vmem:[%s3480_s1 + $0x1f0] sm:$0xff] }
  0x78   : > { %2367 = vmatprep.mubr.f32.mxu0 %v2979_v49  ;;  %v1790_v49 = vld [vmem:[%s3480_s1 + $0x3f8] sm:$0xff]  ;;  %v2547_v26 = vpack.c.bf16 %v1726_v19, %v1725_v22 }
  0x79   : > { %2538 = vmatpush3.bf16.msra.mxu1 %v2535_v2  ;;  %v2675_v27 = vpack.c.bf16 %v1790_v49, %v1789_v20 }
  0x7a   : > { %2666 = vmatpush3.bf16.msra.mxu0 %v2663_v3  ;;  %2540 = vmatprep.subr.bf16.mxu1 %v2539_v10 }
  0x7b   : > { %2668 = vmatprep.subr.bf16.mxu0 %v2667_v12 }
  0x7d   : > { %2542 = vmatpush3.bf16.msra.mxu1 %v2539_v10 }
  0x7e   : > { %2670 = vmatpush3.bf16.msra.mxu0 %v2667_v12  ;;  %2544 = vmatprep.subr.bf16.mxu1 %v2543_v16 }
  0x7f   : > { %2672 = vmatprep.subr.bf16.mxu0 %v2671_v18 }
  0x81   : > { %2546 = vmatpush3.bf16.msra.mxu1 %v2543_v16 }
  0x82   : > { %2674 = vmatpush3.bf16.msra.mxu0 %v2671_v18  ;;  %2548 = vmatprep.subr.bf16.mxu1 %v2547_v26 }
  0x83   : > { %2676 = vmatprep.subr.bf16.mxu0 %v2675_v27 }
  0x85   : > { %2550 = vmatpush3.bf16.msra.mxu1 %v2547_v26 }
  0x86   : > { %2678 = vmatpush3.bf16.msra.mxu0 %v2675_v27  ;;  %2711 = vmatprep.subr.bf16.mxu1 %v2679_v30 }
  0x87   : > { %2680 = vmatprep.subr.bf16.mxu0 %v2679_v30 }
  0x88   : > { %2192 = vmatmul.mubr.f32.vlgmr.msra.gmra.mrb[0].mxu1 %v3187_v32  ;;  %v1797_v32 = vld [vmem:[%s3480_s1 + $0x430] sm:$0xff] }
  0x89   : > { %2368 = vmatmul.mubr.f32.vlgmr.msra.gmra.mrb[0].mxu0 %v3009_v5  ;;  %2719 = vmatpush3.bf16.msra.mxu1 %v2679_v30  ;;  %v2691_v5 = vpack.c.bf16 %v1798_v41, %v1797_v32 }
  0x8a   : > { %2682 = vmatpush3.bf16.msra.mxu0 %v2679_v30  ;;  %2194 = vmatprep.mubr.f32.mxu1 %v3192_v34  ;;  %v1800_v34 = vld [vmem:[%s3480_s1 + $0x448] sm:$0xff] }
  0x8b   : > { %2370 = vmatprep.mubr.f32.mxu0 %v3013_v11  ;;  %2684 = vmatprep.subr.bf16.mxu0 %v2683_v37  ;;  %v1799_v11 = vld [vmem:[%s3480_s1 + $0x440] sm:$0xff] }
  0x8c   : > { %2195 = vmatmul.mubr.f32.gmra.mrb[2].mxu1 %v3211_v42  ;;  %2712 = vmatprep.subr.bf16.mxu1 %v2683_v37  ;;  %v1801_v42 = vld [vmem:[%s3480_s1 + $0x450] sm:$0xff] }
  0x8d   : > { %2371 = vmatmul.mubr.f32.gmra.mrb[2].mxu0 %v3023_v17  ;;  %2720 = vmatpush3.bf16.msra.mxu1 %v2683_v37  ;;  %v1268_v17 = vld [vmem:[#allocation2 + $0x91] sm:$0xff] }
  0x8e   : > { %2686 = vmatpush3.bf16.msra.mxu0 %v2683_v37  ;;  %2197 = vmatprep.mubr.f32.mxu1 %v3216_v44  ;;  %v1802_v44 = vld [vmem:[%s3480_s1 + $0x458] sm:$0xff] }
  0x8f   : > { %2373 = vmatprep.mubr.f32.mxu0 %v3033_v21  ;;  %2688 = vmatprep.subr.bf16.mxu0 %v2687_v40  ;;  %v2695_v21 = vpack.c.bf16 %v1800_v34, %v1799_v11 }
  0x90   : > { %2198 = vmatmul.mubr.f32.gmra.mrb[4].mxu1 %v3235_v53  ;;  %2713 = vmatprep.subr.bf16.mxu1 %v2687_v40  ;;  %v1804_v53 = vld [vmem:[%s3480_s1 + $0x468] sm:$0xff] }
  0x91   : > { %2374 = vmatmul.mubr.f32.gmra.mrb[4].mxu0 %v3037_v23  ;;  %2721 = vmatpush3.bf16.msra.mxu1 %v2687_v40  ;;  %v2699_v23 = vpack.c.bf16 %v1802_v44, %v1801_v42 }
  0x92   : > { %2690 = vmatpush3.bf16.msra.mxu0 %v2687_v40  ;;  %2200 = vmatprep.mubr.f32.mxu1 %v3240_v55 }
  0x93   : > { %2376 = vmatprep.mubr.f32.mxu0 %v3040_v25  ;;  %2692 = vmatprep.subr.bf16.mxu0 %v2691_v5  ;;  %v1803_v25 = vld [vmem:[%s3480_s1 + $0x460] sm:$0xff] }
  0x94   : > { %2201 = vmatmul.mubr.f32.gmra.mrb[6].mxu1 %v3355_v1  ;;  %2714 = vmatprep.subr.bf16.mxu1 %v2691_v5  ;;  %v2703_v55 = vpack.c.bf16 %v1804_v53, %v1803_v25 }
  0x95   : > { %2377 = vmatmul.mubr.f32.gmra.mrb[6].mxu0 %v1268_v17  ;;  %2722 = vmatpush3.bf16.msra.mxu1 %v2691_v5 }
  0x96   : > { %2694 = vmatpush3.bf16.msra.mxu0 %v2691_v5  ;;  %2715 = vmatprep.subr.bf16.mxu1 %v2695_v21 }
  0x97   : > { %2696 = vmatprep.subr.bf16.mxu0 %v2695_v21  ;;  %2411 = vmatprep.mubr.f32.mxu0 %v3172_v24  ;;  %v1406_v24 = vld [vmem:[#allocation2 + $0x92] sm:$0xff] }
  0x98   : > { %2417 = vmatprep.mubr.f32.mxu1 %v3218_v46 }
  0x99   : > { %2723 = vmatpush3.bf16.msra.mxu1 %v2695_v21 }
  0x9a   : > { %2698 = vmatpush3.bf16.msra.mxu0 %v2695_v21  ;;  %2716 = vmatprep.subr.bf16.mxu1 %v2699_v23 }
  0x9b   : > { %2700 = vmatprep.subr.bf16.mxu0 %v2699_v23 }
  0x9d   : > { %2724 = vmatpush3.bf16.msra.mxu1 %v2699_v23 }
  0x9e   : > { %2702 = vmatpush3.bf16.msra.mxu0 %v2699_v23  ;;  %2717 = vmatprep.subr.bf16.mxu1 %v2703_v55 }
  0x9f   : > { %2704 = vmatprep.subr.bf16.mxu0 %v2703_v55 }
  0xa1   : > { %2725 = vmatpush3.bf16.msra.mxu1 %v2703_v55 }
  0xa2   : > { %2706 = vmatpush3.bf16.msra.mxu0 %v2703_v55  ;;  %2718 = vmatprep.subr.bf16.mxu1 %v2707_v48 }
  0xa3   : > { %2708 = vmatprep.subr.bf16.mxu0 %v2707_v48 }
  0xa5   : > { %2726 = vmatpush3.bf16.msra.mxu1 %v2707_v48 }
  0xa6   : > { %2710 = vmatpush3.bf16.msra.mxu0 %v2707_v48 }
  0xa8   : > { %2418 = vmatmul.mubr.f32.vlgmr.msra.gmra.mrb[8].mxu1 %v3238_v54 }
  0xa9   : > { %2412 = vmatmul.mubr.f32.vlgmr.msra.gmra.mrb[0].mxu0 %v3190_v33  ;;  %2420 = vmatprep.mubr.f32.mxu1 %v3242_v58 }
  0xaa   : > { %2414 = vmatprep.mubr.f32.mxu0 %v3194_v36 }
  0xac   : > { %2421 = vmatmul.mubr.f32.gmra.mrb[10].mxu1 %v1406_v24 }
  0xad   : > { %2415 = vmatmul.mubr.f32.gmra.mrb[2].mxu0 %v3214_v43 }
 0x15b   : > { %v2193_v46 = vpop.f32.mrb[0].mxu1 }
 0x15c   : > { %v799_v50 = vpop.f32.mrb[1].mxu1 }
 0x15f   : > { %v2196_v56 = vpop.f32.mrb[2].mxu1 }
 0x160   : > { %v809_v51 = vpop.f32.mrb[3].mxu1 }
 0x163   : > { %v2199_v52 = vpop.f32.mrb[4].mxu1 }
 0x164   : > { %v2375_v57 = vpop.f32.mrb[4].mxu0  ;;  %v819_v59 = vpop.f32.mrb[5].mxu1 }
 0x165   : > { %v2731_v60 = vadd.f32 %v2375_v57, %v2199_v52  ;;  %v1372_v54 = vpop.f32.mrb[5].mxu0 }
 0x166   : > { %v2733_v61 = vadd.f32 %v1372_v54, %v819_v59 }
 0x167   : > { %v2202_v33 = vpop.f32.mrb[6].mxu1 }
 0x168   : > { %v2378_v62 = vpop.f32.mrb[6].mxu0  ;;  %v829_v58 = vpop.f32.mrb[7].mxu1 }
 0x169   : > { %v2735_v63 = vadd.f32 %v2378_v62, %v2202_v33  ;;  %v1382_v0 = vpop.f32.mrb[7].mxu0 }
 0x16a   : > { %v2737_v36 = vadd.f32 %v1382_v0, %v829_v58 }
 0x17b   : > { %v2419_v43 = vpop.f32.mrb[8].mxu1 }
 0x17c   : > { %v2413_v1 = vpop.f32.mrb[0].mxu0  ;;  %v2732_v2 = vadd.f32 %v2731_v60, %v2419_v43  ;;  %v1510_v3 = vpop.f32.mrb[9].mxu1 }
 0x17d   : > { %v2727_v4 = vadd.f32 %v2413_v1, %v2193_v46  ;;  %v1490_v6 = vpop.f32.mrb[1].mxu0  ;;  %v2734_v8 = vadd.f32 %v2733_v61, %v1510_v3 }
 0x17e   : > { %1578 = vst [vmem:[%s231_s7 + $0x28] sm:$0xff] %v2732_v2  ;;  %v2728_v9 = vadd.f32 %v1490_v6, %v799_v50  ;;  %v1556_v38 = vmul.f32 %v2732_v2, %v2732_v2 }
 0x17f   : > { %v1552_v10 = vmul.f32 %v2727_v4, %v2727_v4  ;;  %1574 = vst [vmem:[%s231_s7 + $0x8] sm:$0xff] %v2727_v4  ;;  %1577 = vst [vmem:[%s231_s7 + $0x20] sm:$0xff] %v2734_v8  ;;  %v2422_v12 = vpop.f32.mrb[10].mxu1  ;;  %v1555_v31 = vmul.f32 %v2734_v8, %v2734_v8 }
 0x180   : > { %v1537_v13 = vadd.f32 %v2728_v9, %v2727_v4  ;;  %v1551_v14 = vmul.f32 %v2728_v9, %v2728_v9  ;;  %1573 = vst [vmem:[%s231_s7] sm:$0xff] %v2728_v9  ;;  %v2416_v15 = vpop.f32.mrb[2].mxu0  ;;  %v2736_v7 = vadd.f32 %v2735_v63, %v2422_v12  ;;  %v1520_v16 = vpop.f32.mrb[11].mxu1 }
 0x181   : > { %v2729_v18 = vadd.f32 %v2416_v15, %v2196_v56  ;;  %v1500_v22 = vpop.f32.mrb[3].mxu0  ;;  %v2738_v19 = vadd.f32 %v2737_v36, %v1520_v16 }
 0x182   : > { %v1559_v20 = vadd.f32 %v1552_v10, %v1551_v14  ;;  %1580 = vst [vmem:[%s231_s7 + $0x38] sm:$0xff] %v2736_v7  ;;  %v2730_v49 = vadd.f32 %v1500_v22, %v809_v51  ;;  %v1558_v11 = vmul.f32 %v2736_v7, %v2736_v7 }
 0x183   : > { %1576 = vst [vmem:[%s231_s7 + $0x18] sm:$0xff] %v2729_v18  ;;  %1579 = vst [vmem:[%s231_s7 + $0x30] sm:$0xff] %v2738_v19  ;;  %v1554_v28 = vmul.f32 %v2729_v18, %v2729_v18  ;;  %v1557_v41 = vmul.f32 %v2738_v19, %v2738_v19 }
 0x184   : > { %v1538_v26 = vadd.f32 %v2730_v49, %v1537_v13  ;;  %v1553_v27 = vmul.f32 %v2730_v49, %v2730_v49  ;;  %1575 = vst [vmem:[%s231_s7 + $0x10] sm:$0xff] %v2730_v49 }
 0x186   : > { %v1539_v29 = vadd.f32 %v2729_v18, %v1538_v26  ;;  %v1560_v30 = vadd.f32 %v1559_v20, %v1553_v27 }
 0x188   : > { %v1561_v35 = vadd.f32 %v1560_v30, %v1554_v28  ;;  %v1540_v37 = vadd.f32 %v2734_v8, %v1539_v29 }
 0x18a   : > { %v1541_v39 = vadd.f32 %v2732_v2, %v1540_v37  ;;  %v1562_v40 = vadd.f32 %v1561_v35, %v1555_v31 }
 0x18c   : > { %v1542_v32 = vadd.f32 %v2738_v19, %v1541_v39  ;;  %v1563_v5 = vadd.f32 %v1562_v40, %v1556_v38 }
 0x18e   : > { %v1543_v34 = vadd.f32 %v2736_v7, %v1542_v32  ;;  %v1564_v17 = vadd.f32 %v1563_v5, %v1557_v41 }
 0x190   : > { %v1544_v21 = vrot.slane %v1543_v34, 4  ;;  %v1565_v42 = vadd.f32 %v1564_v17, %v1558_v11 }
 0x192   : > { %v1545_v44 = vadd.f32 %v1544_v21, %v1543_v34  ;;  %v1566_v23 = vrot.slane %v1565_v42, 4 }
 0x194   : > { %v1546_v25 = vrot.slane %v1545_v44, 2  ;;  %v1567_v53 = vadd.f32 %v1566_v23, %v1565_v42 }
 0x196   : > { %v1547_v55 = vadd.f32 %v1546_v25, %v1545_v44  ;;  %v1568_v45 = vrot.slane %v1567_v53, 2 }
 0x198   : > { %v1548_v47 = vrot.slane %v1547_v55, 1  ;;  %v1569_v48 = vadd.f32 %v1568_v45, %v1567_v53 }
 0x19a   : > { %v1549_v24 = vadd.f32 %v1548_v47, %v1547_v55  ;;  %v1570_v46 = vrot.slane %v1569_v48, 1 }
 0x19c   : > { %1550 = vst [vmem:[%s235_s11] sm:$0x1] %v1549_v24  ;;  %v1571_v50 = vadd.f32 %v1570_v46, %v1569_v48 }
 0x19e   : > { %1572 = vst [vmem:[%s235_s11 + $0x1] sm:$0x1] %v1571_v50 }
 0x19f PF: > { %s16_s18 = sadd.s32 1, %s2806_s18  }
 0x1a0   : > { %p13_p4 = scmp.ge.s32.totalorder %s16_s18, 4  }
 0x1a2   :  { %15 = sbr.rel (!%p13_p4) target bundleno = 1 (0x1), region = 88 }

// kernel: down_forward.5
= control target key start
LH: loop header
LB: loop body
LE: loop exit
PB: predicated region body
PF: predicated region fallthrough
CT: control target
= control target key end

     0   :  { %s2831_s18 = smov 0   ;;  %s3471_s0 = inlined_call_operand.vmem [shape: f32[2,8,8,128], index: 0, kind: input, shape index: {}]   ;;  %s3472_s1 = inlined_call_operand.vmem [shape: f32[9,128,128], index: 1, kind: input, shape index: {}]   ;;  %s3473_s2 = inlined_call_operand.vmem [shape: f32[1,128], index: 2, kind: input, shape index: {}]   ;;  %s3474_s3 = inlined_call_operand.vmem [shape: f32[1,128], index: 3, kind: input, shape index: {}]   ;;  %s3475_s4 = inlined_call_operand.vmem [shape: f32[2,8,8,128], index: 4, kind: output, shape index: {0}]   ;;  %s3476_s5 = inlined_call_operand.vmem [shape: f32[2,2,128], index: 5, kind: output, shape index: {1}]  }
   0x1 LB: > { %s1659_s19 = sadd.s32 4294967295, %s2798_s18   ;;  %p1663_p0 = scmp.ge.s32.totalorder %s2798_s18, 1  ;;  %s2798_s18 = sphi %s2831_s18, %s16_s18  }
   0x2   : > { %p190_p1 = scmp.lt.s32.totalorder %s2798_s18, 3 }
   0x4   : > { %p191_p2 = pnand %p1663_p0, %p190_p1 }
   0x5   : > { %v1671_v0 = vld [vmem:[%s3472_s1 + $0x80] sm:$0xff] (!%p191_p2)  ;;  %v1672_v1 = vld [vmem:[%s3472_s1 + $0x88] sm:$0xff] (!%p191_p2)  ;;  %p2850_p3 = scmp.lt.s32.totalorder (!%p191_p2), %s1659_s19, 1  ;;  %v1673_v5 = vld [vmem:[%s3472_s1 + $0x90] sm:$0xff] (!%p191_p2)  ;;  %v2800_v7 = vmov (!%p191_p2), 0.0  }
   0x6   : > { %194 = sbr.rel (%p191_p2) target bundleno = 415 (0x19f), region = 36  ;;  %v1719_v2 = vld [vmem:[%s3472_s1 + $0x200] sm:$0xff] (!%p191_p2)  ;;  %v2415_v3 = vpack.c.bf16 (!%p191_p2), %v1672_v1, %v1671_v0  ;;  %v1720_v4 = vld [vmem:[%s3472_s1 + $0x208] sm:$0xff] (!%p191_p2)  ;;  %v1674_v6 = vld [vmem:[%s3472_s1 + $0x98] sm:$0xff] (!%p191_p2)  ;;  %274 = vst [vmem:[#allocation2] sm:$0xff] (!%p191_p2), %v2800_v7 }
   0x7   : > { %275 = vst [vmem:[#allocation2 + $0x8] sm:$0x3] (!%p191_p2), %v2800_v7  ;;  %276 = vst [vmem:[#allocation2 + $0x10] sm:$0xff] (!%p191_p2), %v2800_v7  ;;  %v2543_v8 = vpack.c.bf16 (!%p191_p2), %v1720_v4, %v1719_v2  ;;  %v2419_v9 = vpack.c.bf16 (!%p191_p2), %v1674_v6, %v1673_v5  ;;  %v1721_v10 = vld [vmem:[%s3472_s1 + $0x210] sm:$0xff] (!%p191_p2)  ;;  %v1722_v11 = vld [vmem:[%s3472_s1 + $0x218] sm:$0xff] (!%p191_p2) }
   0x8   : > { %277 = vst [vmem:[#allocation2 + $0x18] sm:$0x3] (!%p191_p2), %v2800_v7  ;;  %278 = vst [vmem:[#allocation2 + $0x20] sm:$0xff] (!%p191_p2), %v2800_v7  ;;  %v1675_v12 = vld [vmem:[%s3472_s1 + $0xa0] sm:$0xff] (!%p191_p2)  ;;  %2416 = vmatprep.subr.bf16.mxu1 (!%p191_p2), %v2415_v3  ;;  %v2547_v13 = vpack.c.bf16 (!%p191_p2), %v1722_v11, %v1721_v10  ;;  %v1676_v14 = vld [vmem:[%s3472_s1 + $0xa8] sm:$0xff] (!%p191_p2) }
   0x9   : > { %279 = vst [vmem:[#allocation2 + $0x28] sm:$0x3] (!%p191_p2), %v2800_v7  ;;  %280 = vst [vmem:[#allocation2 + $0x30] sm:$0xff] (!%p191_p2), %v2800_v7  ;;  %v1723_v15 = vld [vmem:[%s3472_s1 + $0x220] sm:$0xff] (!%p191_p2)  ;;  %v1724_v16 = vld [vmem:[%s3472_s1 + $0x228] sm:$0xff] (!%p191_p2)  ;;  %2544 = vmatprep.subr.bf16.mxu0 (!%p191_p2), %v2543_v8  ;;  %2418 = vmatpush3.bf16.msra.mxu1 (!%p191_p2), %v2415_v3  ;;  %v2423_v17 = vpack.c.bf16 (!%p191_p2), %v1676_v14, %v1675_v12 }
   0xa   : > { %281 = vst [vmem:[#allocation2 + $0x38] sm:$0x3] (!%p191_p2), %v2800_v7  ;;  %282 = vst [vmem:[#allocation2 + $0x40] sm:$0xff] (!%p191_p2), %v2800_v7  ;;  %2546 = vmatpush3.bf16.msra.mxu0 (!%p191_p2), %v2543_v8  ;;  %2420 = vmatprep.subr.bf16.mxu1 (!%p191_p2), %v2419_v9  ;;  %v2551_v18 = vpack.c.bf16 (!%p191_p2), %v1724_v16, %v1723_v15  ;;  %v1677_v19 = vld [vmem:[%s3472_s1 + $0xb0] sm:$0xff] (!%p191_p2)  ;;  %v1678_v20 = vld [vmem:[%s3472_s1 + $0xb8] sm:$0xff] (!%p191_p2) }
   0xb   : > { %283 = vst [vmem:[#allocation2 + $0x48] sm:$0x3] (!%p191_p2), %v2800_v7  ;;  %284 = vst [vmem:[#allocation2 + $0x50] sm:$0xff] (!%p191_p2), %v2800_v7  ;;  %2548 = vmatprep.subr.bf16.mxu0 (!%p191_p2), %v2547_v13  ;;  %v1725_v21 = vld [vmem:[%s3472_s1 + $0x230] sm:$0xff] (!%p191_p2)  ;;  %v1726_v22 = vld [vmem:[%s3472_s1 + $0x238] sm:$0xff] (!%p191_p2)  ;;  %v2427_v23 = vpack.c.bf16 (!%p191_p2), %v1678_v20, %v1677_v19 }
   0xc   : > { %285 = vst [vmem:[#allocation2 + $0x58] sm:$0x3] (!%p191_p2), %v2800_v7  ;;  %286 = vst [vmem:[#allocation2 + $0x60] sm:$0xff] (!%p191_p2), %v2800_v7  ;;  %v2555_v24 = vpack.c.bf16 (!%p191_p2), %v1726_v22, %v1725_v21  ;;  %v1679_v25 = vld [vmem:[%s3472_s1 + $0xc0] sm:$0xff] (!%p191_p2)  ;;  %v1680_v26 = vld [vmem:[%s3472_s1 + $0xc8] sm:$0xff] (!%p191_p2) }
   0xd   : > { %287 = vst [vmem:[#allocation2 + $0x68] sm:$0x3] %v2800_v7  ;;  %288 = vst [vmem:[#allocation2 + $0x70] sm:$0xff] %v2800_v7  ;;  %s3479_s19 = smov (!%p2850_p3, %s1659_s19), 1  ;;  %2422 = vmatpush3.bf16.msra.mxu1 %v2419_v9  ;;  %v1727_v28 = vld [vmem:[%s3472_s1 + $0x240] sm:$0xff]  ;;  %v1728_v29 = vld [vmem:[%s3472_s1 + $0x248] sm:$0xff]  ;;  %v2431_v33 = vpack.c.bf16 %v1680_v26, %v1679_v25 }
   0xe   : > { %289 = vst [vmem:[#allocation2 + $0x78] sm:$0x3] %v2800_v7  ;;  %290 = vst [vmem:[#allocation2 + $0x80] sm:$0xff] %v2800_v7  ;;  %s1801_s22 = sshll.u32 %s3479_s19, 6  ;;  %2550 = vmatpush3.bf16.msra.mxu0 %v2547_v13  ;;  %2424 = vmatprep.subr.bf16.mxu1 %v2423_v17  ;;  %v327_v27 = vld [vmem:[#allocation2 + $0x1] sm:$0xff]  ;;  %v2559_v36 = vpack.c.bf16 %v1728_v29, %v1727_v28  ;;  %v1681_v37 = vld [vmem:[%s3472_s1 + $0xd0] sm:$0xff] }
   0xf   : > { %291 = vst [vmem:[#allocation2 + $0x88] sm:$0x3] %v2800_v7  ;;  %292 = vst [vmem:[#allocation2 + $0x90] sm:$0xff] %v2800_v7  ;;  %s2925_s8 = scalar_lea.vmem %s3471_s0, %s1801_s22  ;;  %2552 = vmatprep.subr.bf16.mxu0 %v2551_v18  ;;  %2051 = vmatprep.mubr.f32.mxu1 %v327_v27  ;;  %v1669_v31 = vld [vmem:[%s3473_s2] ss:$0 sm:$0xff]  ;;  %v1682_v38 = vld [vmem:[%s3472_s1 + $0xd8] sm:$0xff]  ;;  %s231_s7 = scalar_lea.vmem %s3475_s4, %s1801_s22 }
  0x10   : > { %293 = vst [vmem:[#allocation2 + $0x98] sm:$0x3] %v2800_v7  ;;  %v236_v30 = vld [vmem:[%s2925_s8] sm:$0xff]  ;;  %v237_v35 = vld [vmem:[%s2925_s8 + $0x8] sm:$0xff]  ;;  %v1729_v40 = vld [vmem:[%s3472_s1 + $0x250] sm:$0xff]  ;;  %v2435_v44 = vpack.c.bf16 %v1682_v38, %v1681_v37  ;;  %s1668_s22 = sshll.u32 %s3479_s19, 1 }
  0x11   : > { %2426 = vmatpush3.bf16.msra.mxu1 %v2423_v17  ;;  %v2946_v32 = vld [vmem:[%s3474_s3] ss:$0 sm:$0xff]  ;;  %v251_v34 = vmul.f32 %v1669_v31, %v236_v30  ;;  %v252_v39 = vmul.f32 %v1669_v31, %v237_v35  ;;  %v1730_v41 = vld [vmem:[%s3472_s1 + $0x258] sm:$0xff]  ;;  %v1684_v47 = vld [vmem:[%s3472_s1 + $0xe8] sm:$0xff]  ;;  %s235_s11 = scalar_lea.vmem %s3476_s5, %s1668_s22 }
  0x12   : > { %2554 = vmatpush3.bf16.msra.mxu0 %v2551_v18  ;;  %2428 = vmatprep.subr.bf16.mxu1 %v2427_v23  ;;  %v2563_v45 = vpack.c.bf16 %v1730_v41, %v1729_v40  ;;  %v1683_v46 = vld [vmem:[%s3472_s1 + $0xe0] sm:$0xff]  ;;  %v1732_v49 = vld [vmem:[%s3472_s1 + $0x268] sm:$0xff]  ;;  %v238_v50 = vld [vmem:[%s2925_s8 + $0x10] sm:$0xff] }
  0x13   : > { %2556 = vmatprep.subr.bf16.mxu0 %v2555_v24  ;;  %v2962_v42 = vadd.f32 %v2946_v32, %v251_v34  ;;  %v2965_v43 = vadd.f32 %v2946_v32, %v252_v39  ;;  %v1731_v48 = vld [vmem:[%s3472_s1 + $0x260] sm:$0xff]  ;;  %v253_v51 = vmul.f32 %v1669_v31, %v238_v50  ;;  %v239_v52 = vld [vmem:[%s2925_s8 + $0x18] sm:$0xff]  ;;  %v2439_v53 = vpack.c.bf16 %v1684_v47, %v1683_v46  ;;  %v1685_v57 = vld [vmem:[%s3472_s1 + $0xf0] sm:$0xff] }
  0x14   : > { %v254_v54 = vmul.f32 %v1669_v31, %v239_v52  ;;  %v240_v55 = vld [vmem:[%s2925_s8 + $0x20] sm:$0xff]  ;;  %v2567_v56 = vpack.c.bf16 %v1732_v49, %v1731_v48  ;;  %v1686_v58 = vld [vmem:[%s3472_s1 + $0xf8] sm:$0xff]  ;;  %v241_v61 = vld [vmem:[%s2925_s8 + $0x28] sm:$0xff] }
  0x15   : > { %2430 = vmatpush3.bf16.msra.mxu1 %v2427_v23  ;;  %295 = vst [vmem:[#allocation2 + $0x11] sm:$0xff] %v2962_v42  ;;  %2227 = vmatprep.mubr.f32.mxu0 %v2962_v42  ;;  %296 = vst [vmem:[#allocation2 + $0x21] sm:$0xff] %v2965_v43  ;;  %v2992_v59 = vadd.f32 %v2946_v32, %v253_v51  ;;  %v255_v60 = vmul.f32 %v1669_v31, %v240_v55  ;;  %v1733_v62 = vld [vmem:[%s3472_s1 + $0x270] sm:$0xff]  ;;  %v1734_v63 = vld [vmem:[%s3472_s1 + $0x278] sm:$0xff] }
  0x16   : > { %2558 = vmatpush3.bf16.msra.mxu0 %v2555_v24  ;;  %2432 = vmatprep.subr.bf16.mxu1 %v2431_v33  ;;  %v3002_v0 = vadd.f32 %v2946_v32, %v254_v54  ;;  %v256_v1 = vmul.f32 %v1669_v31, %v241_v61  ;;  %v242_v2 = vld [vmem:[%s2925_s8 + $0x30] sm:$0xff]  ;;  %v243_v5 = vld [vmem:[%s2925_s8 + $0x38] sm:$0xff]  ;;  %v2443_v6 = vpack.c.bf16 %v1686_v58, %v1685_v57  ;;  %v311_v11 = vld [vmem:[%s3472_s1] sm:$0xff] }
  0x17   : > { %2560 = vmatprep.subr.bf16.mxu0 %v2559_v36  ;;  %297 = vst [vmem:[#allocation2 + $0x31] sm:$0xff] %v2992_v59  ;;  %v3007_v3 = vadd.f32 %v2946_v32, %v255_v60  ;;  %v257_v4 = vmul.f32 %v1669_v31, %v242_v2  ;;  %v258_v9 = vmul.f32 %v1669_v31, %v243_v5  ;;  %v312_v12 = vld [vmem:[%s3472_s1 + $0x8] sm:$0xff]  ;;  %v1735_v14 = vld [vmem:[%s3472_s1 + $0x280] sm:$0xff]  ;;  %v313_v19 = vld [vmem:[%s3472_s1 + $0x10] sm:$0xff] }
  0x18   : > { %298 = vst [vmem:[#allocation2 + $0x41] sm:$0xff] %v3002_v0  ;;  %v3012_v8 = vadd.f32 %v2946_v32, %v256_v1  ;;  %v2571_v10 = vpack.c.bf16 %v1734_v63, %v1733_v62  ;;  %v1736_v15 = vld [vmem:[%s3472_s1 + $0x288] sm:$0xff]  ;;  %v2447_v17 = vpack.c.bf16 %v312_v12, %v311_v11  ;;  %v314_v20 = vld [vmem:[%s3472_s1 + $0x18] sm:$0xff]  ;;  %v1737_v21 = vld [vmem:[%s3472_s1 + $0x290] sm:$0xff] }
  0x19   : > { %2434 = vmatpush3.bf16.msra.mxu1 %v2431_v33  ;;  %299 = vst [vmem:[#allocation2 + $0x51] sm:$0xff] %v3007_v3  ;;  %v3022_v13 = vadd.f32 %v2946_v32, %v257_v4  ;;  %v3032_v16 = vadd.f32 %v2946_v32, %v258_v9  ;;  %v2575_v18 = vpack.c.bf16 %v1736_v15, %v1735_v14  ;;  %v1738_v22 = vld [vmem:[%s3472_s1 + $0x298] sm:$0xff]  ;;  %v315_v25 = vld [vmem:[%s3472_s1 + $0x20] sm:$0xff]  ;;  %v316_v26 = vld [vmem:[%s3472_s1 + $0x28] sm:$0xff] }
  0x1a   : > { %2562 = vmatpush3.bf16.msra.mxu0 %v2559_v36  ;;  %2436 = vmatprep.subr.bf16.mxu1 %v2435_v44  ;;  %300 = vst [vmem:[#allocation2 + $0x61] sm:$0xff] %v3012_v8  ;;  %v2451_v23 = vpack.c.bf16 %v314_v20, %v313_v19  ;;  %v2579_v24 = vpack.c.bf16 %v1738_v22, %v1737_v21  ;;  %v1739_v27 = vld [vmem:[%s3472_s1 + $0x2a0] sm:$0xff]  ;;  %v1740_v28 = vld [vmem:[%s3472_s1 + $0x2a8] sm:$0xff]  ;;  %v317_v31 = vld [vmem:[%s3472_s1 + $0x30] sm:$0xff] }
  0x1b   : > { %2564 = vmatprep.subr.bf16.mxu0 %v2563_v45  ;;  %301 = vst [vmem:[#allocation2 + $0x71] sm:$0xff] %v3022_v13  ;;  %302 = vst [vmem:[#allocation2 + $0x81] sm:$0xff] %v3032_v16  ;;  %v2455_v29 = vpack.c.bf16 %v316_v26, %v315_v25  ;;  %v2583_v30 = vpack.c.bf16 %v1740_v28, %v1739_v27  ;;  %v318_v32 = vld [vmem:[%s3472_s1 + $0x38] sm:$0xff]  ;;  %v1741_v33 = vld [vmem:[%s3472_s1 + $0x2b0] sm:$0xff] }
  0x1c   : > { %v1742_v34 = vld [vmem:[%s3472_s1 + $0x2b8] sm:$0xff]  ;;  %v2459_v35 = vpack.c.bf16 %v318_v32, %v317_v31  ;;  %v319_v37 = vld [vmem:[%s3472_s1 + $0x40] sm:$0xff]  ;;  %v320_v38 = vld [vmem:[%s3472_s1 + $0x48] sm:$0xff] }
  0x1d   : > { %2438 = vmatpush3.bf16.msra.mxu1 %v2435_v44  ;;  %v2587_v36 = vpack.c.bf16 %v1742_v34, %v1741_v33  ;;  %v1743_v39 = vld [vmem:[%s3472_s1 + $0x2c0] sm:$0xff]  ;;  %v1744_v40 = vld [vmem:[%s3472_s1 + $0x2c8] sm:$0xff]  ;;  %v2463_v41 = vpack.c.bf16 %v320_v38, %v319_v37  ;;  %v321_v44 = vld [vmem:[%s3472_s1 + $0x50] sm:$0xff] }
  0x1e   : > { %2566 = vmatpush3.bf16.msra.mxu0 %v2563_v45  ;;  %2440 = vmatprep.subr.bf16.mxu1 %v2439_v53  ;;  %v322_v45 = vld [vmem:[%s3472_s1 + $0x58] sm:$0xff]  ;;  %v1745_v46 = vld [vmem:[%s3472_s1 + $0x2d0] sm:$0xff]  ;;  %v323_v51 = vld [vmem:[%s3472_s1 + $0x60] sm:$0xff] }
  0x1f   : > { %2568 = vmatprep.subr.bf16.mxu0 %v2567_v56  ;;  %v1746_v47 = vld [vmem:[%s3472_s1 + $0x2d8] sm:$0xff]  ;;  %v2467_v49 = vpack.c.bf16 %v322_v45, %v321_v44  ;;  %v324_v52 = vld [vmem:[%s3472_s1 + $0x68] sm:$0xff]  ;;  %v325_v57 = vld [vmem:[%s3472_s1 + $0x70] sm:$0xff] }
  0x20   : > { %v3110_v48 = vld [vmem:[#allocation2 + $0x12] sm:$0xff]  ;;  %v2595_v50 = vpack.c.bf16 %v1746_v47, %v1745_v46  ;;  %v1748_v54 = vld [vmem:[%s3472_s1 + $0x2e8] sm:$0xff]  ;;  %v2471_v55 = vpack.c.bf16 %v324_v52, %v323_v51  ;;  %v1687_v1 = vld [vmem:[%s3472_s1 + $0x100] sm:$0xff] }
  0x21   : > { %2442 = vmatpush3.bf16.msra.mxu1 %v2439_v53  ;;  %v1747_v53 = vld [vmem:[%s3472_s1 + $0x2e0] sm:$0xff]  ;;  %v326_v58 = vld [vmem:[%s3472_s1 + $0x78] sm:$0xff]  ;;  %v1749_v60 = vld [vmem:[%s3472_s1 + $0x2f0] sm:$0xff] }
  0x22   : > { %2570 = vmatpush3.bf16.msra.mxu0 %v2567_v56  ;;  %2444 = vmatprep.subr.bf16.mxu1 %v2443_v6  ;;  %v2599_v56 = vpack.c.bf16 %v1748_v54, %v1747_v53  ;;  %v1750_v61 = vld [vmem:[%s3472_s1 + $0x2f8] sm:$0xff]  ;;  %v2475_v62 = vpack.c.bf16 %v326_v58, %v325_v57  ;;  %v1688_v2 = vld [vmem:[%s3472_s1 + $0x108] sm:$0xff]  ;;  %v1751_v4 = vld [vmem:[%s3472_s1 + $0x300] sm:$0xff] }
  0x23   : > { %2572 = vmatprep.subr.bf16.mxu0 %v2571_v10  ;;  %v2603_v63 = vpack.c.bf16 %v1750_v61, %v1749_v60  ;;  %v1752_v5 = vld [vmem:[%s3472_s1 + $0x308] sm:$0xff]  ;;  %v1690_v11 = vld [vmem:[%s3472_s1 + $0x118] sm:$0xff]  ;;  %v1753_v12 = vld [vmem:[%s3472_s1 + $0x310] sm:$0xff] }
  0x24   : > { %v2607_v9 = vpack.c.bf16 %v1752_v5, %v1751_v4  ;;  %v1754_v14 = vld [vmem:[%s3472_s1 + $0x318] sm:$0xff]  ;;  %v3162_v15 = vld [vmem:[#allocation2 + $0x10] sm:$0xff]  ;;  %v1691_v20 = vld [vmem:[%s3472_s1 + $0x120] sm:$0xff] }
  0x25   : > { %2446 = vmatpush3.bf16.msra.mxu1 %v2443_v6  ;;  %v2479_v6 = vpack.c.bf16 %v1688_v2, %v1687_v1  ;;  %v2611_v19 = vpack.c.bf16 %v1754_v14, %v1753_v12  ;;  %v1692_v21 = vld [vmem:[%s3472_s1 + $0x128] sm:$0xff]  ;;  %v1755_v22 = vld [vmem:[%s3472_s1 + $0x320] sm:$0xff]  ;;  %v3182_v25 = vld [vmem:[#allocation2 + $0x32] sm:$0xff] }
  0x26   : > { %2574 = vmatpush3.bf16.msra.mxu0 %v2571_v10  ;;  %2448 = vmatprep.subr.bf16.mxu1 %v2447_v17  ;;  %v1689_v10 = vld [vmem:[%s3472_s1 + $0x110] sm:$0xff]  ;;  %v2487_v27 = vpack.c.bf16 %v1692_v21, %v1691_v20  ;;  %v3186_v28 = vld [vmem:[#allocation2 + $0x42] sm:$0xff]  ;;  %v1694_v31 = vld [vmem:[%s3472_s1 + $0x138] sm:$0xff] }
  0x27   : > { %2576 = vmatprep.subr.bf16.mxu0 %v2575_v18  ;;  %v3184_v26 = vld [vmem:[#allocation2 + $0x30] sm:$0xff]  ;;  %v1758_v33 = vld [vmem:[%s3472_s1 + $0x338] sm:$0xff]  ;;  %v3203_v34 = vld [vmem:[#allocation2 + $0x40] sm:$0xff] }
  0x28   : > { %2052 = vmatmul.mubr.f32.vlgmr.msra.gmra.mrb[0].mxu1 %v2962_v42  ;;  %v2591_v42 = vpack.c.bf16 %v1744_v40, %v1743_v39  ;;  %v1757_v32 = vld [vmem:[%s3472_s1 + $0x330] sm:$0xff]  ;;  %v3210_v38 = vld [vmem:[#allocation2 + $0x62] sm:$0xff]  ;;  %v1698_v53 = vld [vmem:[%s3472_s1 + $0x158] sm:$0xff] }
  0x29   : > { %2450 = vmatpush3.bf16.msra.mxu1 %v2447_v17  ;;  %2228 = vmatmul.mubr.f32.vlgmr.msra.gmra.mrb[0].mxu0 %v2965_v43  ;;  %v3164_v17 = vld [vmem:[#allocation2 + $0x22] sm:$0xff]  ;;  %v2619_v39 = vpack.c.bf16 %v1758_v33, %v1757_v32  ;;  %v3230_v46 = vld [vmem:[#allocation2 + $0x72] sm:$0xff] }
  0x2a   : > { %2578 = vmatpush3.bf16.msra.mxu0 %v2575_v18  ;;  %2452 = vmatprep.subr.bf16.mxu1 %v2451_v23  ;;  %v2483_v18 = vpack.c.bf16 %v1690_v11, %v1689_v10  ;;  %v1695_v40 = vld [vmem:[%s3472_s1 + $0x140] sm:$0xff]  ;;  %v1760_v44 = vld [vmem:[%s3472_s1 + $0x348] sm:$0xff]  ;;  %v3232_v47 = vld [vmem:[#allocation2 + $0x70] sm:$0xff] }
  0x2b   : > { %2580 = vmatprep.subr.bf16.mxu0 %v2579_v24  ;;  %2054 = vmatprep.mubr.f32.mxu1 %v2965_v43  ;;  %v3227_v45 = vld [vmem:[#allocation2 + $0x60] sm:$0xff]  ;;  %v1697_v52 = vld [vmem:[%s3472_s1 + $0x150] sm:$0xff]  ;;  %v1700_v61 = vld [vmem:[%s3472_s1 + $0x168] sm:$0xff] }
  0x2c   : > { %2230 = vmatprep.mubr.f32.mxu0 %v2992_v59  ;;  %2055 = vmatmul.mubr.f32.gmra.mrb[2].mxu1 %v2992_v59  ;;  %v1761_v54 = vld [vmem:[%s3472_s1 + $0x350] sm:$0xff]  ;;  %v2499_v57 = vpack.c.bf16 %v1698_v53, %v1697_v52  ;;  %v1699_v60 = vld [vmem:[%s3472_s1 + $0x160] sm:$0xff]  ;;  %v1702_v5 = vld [vmem:[%s3472_s1 + $0x178] sm:$0xff] }
  0x2d   : > { %2454 = vmatpush3.bf16.msra.mxu1 %v2451_v23  ;;  %2231 = vmatmul.mubr.f32.gmra.mrb[2].mxu0 %v3002_v0  ;;  %v1756_v23 = vld [vmem:[%s3472_s1 + $0x328] sm:$0xff]  ;;  %v2503_v1 = vpack.c.bf16 %v1700_v61, %v1699_v60  ;;  %v1701_v4 = vld [vmem:[%s3472_s1 + $0x170] sm:$0xff]  ;;  %v1703_v12 = vld [vmem:[%s3472_s1 + $0x180] sm:$0xff] }
  0x2e   : > { %2582 = vmatpush3.bf16.msra.mxu0 %v2579_v24  ;;  %2456 = vmatprep.subr.bf16.mxu1 %v2455_v29  ;;  %v3179_v24 = vld [vmem:[#allocation2 + $0x20] sm:$0xff]  ;;  %v2507_v10 = vpack.c.bf16 %v1702_v5, %v1701_v4  ;;  %v1704_v14 = vld [vmem:[%s3472_s1 + $0x188] sm:$0xff]  ;;  %v1713_v61 = vld [vmem:[%s3472_s1 + $0x1d0] sm:$0xff] }
  0x2f   : > { %2584 = vmatprep.subr.bf16.mxu0 %v2583_v30  ;;  %2057 = vmatprep.mubr.f32.mxu1 %v3002_v0  ;;  %v2511_v20 = vpack.c.bf16 %v1704_v14, %v1703_v12  ;;  %v1707_v32 = vld [vmem:[%s3472_s1 + $0x1a0] sm:$0xff]  ;;  %v1708_v33 = vld [vmem:[%s3472_s1 + $0x1a8] sm:$0xff]  ;;  %v1718_v12 = vld [vmem:[%s3472_s1 + $0x1f8] sm:$0xff] }
  0x30   : > { %2233 = vmatprep.mubr.f32.mxu0 %v3007_v3  ;;  %2058 = vmatmul.mubr.f32.gmra.mrb[4].mxu1 %v3007_v3  ;;  %v1711_v53 = vld [vmem:[%s3472_s1 + $0x1c0] sm:$0xff]  ;;  %v1781_v14 = vld [vmem:[%s3472_s1 + $0x3f0] sm:$0xff] }
  0x31   : > { %2458 = vmatpush3.bf16.msra.mxu1 %v2455_v29  ;;  %2234 = vmatmul.mubr.f32.gmra.mrb[4].mxu0 %v3012_v8  ;;  %v2615_v29 = vpack.c.bf16 %v1756_v23, %v1755_v22  ;;  %v1705_v22 = vld [vmem:[%s3472_s1 + $0x190] sm:$0xff]  ;;  %v1706_v23 = vld [vmem:[%s3472_s1 + $0x198] sm:$0xff]  ;;  %v1715_v5 = vld [vmem:[%s3472_s1 + $0x1e0] sm:$0xff] }
  0x32   : > { %2586 = vmatpush3.bf16.msra.mxu0 %v2583_v30  ;;  %2460 = vmatprep.subr.bf16.mxu1 %v2459_v35  ;;  %v1693_v30 = vld [vmem:[%s3472_s1 + $0x130] sm:$0xff] }
  0x33   : > { %2588 = vmatprep.subr.bf16.mxu0 %v2587_v36  ;;  %2060 = vmatprep.mubr.f32.mxu1 %v3012_v8  ;;  %v2491_v37 = vpack.c.bf16 %v1694_v31, %v1693_v30  ;;  %v2515_v30 = vpack.c.bf16 %v1706_v23, %v1705_v22  ;;  %v1785_v23 = vld [vmem:[%s3472_s1 + $0x410] sm:$0xff] }
  0x34   : > { %2236 = vmatprep.mubr.f32.mxu0 %v3022_v13  ;;  %2061 = vmatmul.mubr.f32.gmra.mrb[6].mxu1 %v3022_v13 }
  0x35   : > { %2462 = vmatpush3.bf16.msra.mxu1 %v2459_v35  ;;  %2237 = vmatmul.mubr.f32.gmra.mrb[6].mxu0 %v3032_v16  ;;  %v3206_v35 = vld [vmem:[#allocation2 + $0x52] sm:$0xff] }
  0x36   : > { %2590 = vmatpush3.bf16.msra.mxu0 %v2587_v36  ;;  %2464 = vmatprep.subr.bf16.mxu1 %v2463_v41  ;;  %v3208_v36 = vld [vmem:[#allocation2 + $0x50] sm:$0xff] }
  0x37   : > { %2592 = vmatprep.subr.bf16.mxu0 %v2591_v42  ;;  %2095 = vmatprep.mubr.f32.mxu1 %v2800_v7 }
  0x38   : > { %2271 = vmatprep.mubr.f32.mxu0 %v3110_v48 }
  0x39   : > { %2466 = vmatpush3.bf16.msra.mxu1 %v2463_v41  ;;  %v1696_v41 = vld [vmem:[%s3472_s1 + $0x148] sm:$0xff] }
  0x3a   : > { %2594 = vmatpush3.bf16.msra.mxu0 %v2591_v42  ;;  %2468 = vmatprep.subr.bf16.mxu1 %v2467_v49  ;;  %v1759_v42 = vld [vmem:[%s3472_s1 + $0x340] sm:$0xff] }
  0x3b   : > { %2596 = vmatprep.subr.bf16.mxu0 %v2595_v50  ;;  %v2623_v51 = vpack.c.bf16 %v1760_v44, %v1759_v42  ;;  %v1710_v42 = vld [vmem:[%s3472_s1 + $0x1b8] sm:$0xff]  ;;  %v1773_v44 = vld [vmem:[%s3472_s1 + $0x3b0] sm:$0xff] }
  0x3d   : > { %2470 = vmatpush3.bf16.msra.mxu1 %v2467_v49  ;;  %v2495_v49 = vpack.c.bf16 %v1696_v41, %v1695_v40  ;;  %v2519_v40 = vpack.c.bf16 %v1708_v33, %v1707_v32  ;;  %v1790_v33 = vld [vmem:[%s3472_s1 + $0x438] sm:$0xff] }
  0x3e   : > { %2598 = vmatpush3.bf16.msra.mxu0 %v2595_v50  ;;  %2472 = vmatprep.subr.bf16.mxu1 %v2471_v55  ;;  %v3234_v50 = vld [vmem:[#allocation2 + $0x82] sm:$0xff] }
  0x3f   : > { %2600 = vmatprep.subr.bf16.mxu0 %v2599_v56 }
  0x41   : > { %2474 = vmatpush3.bf16.msra.mxu1 %v2471_v55  ;;  %v1762_v55 = vld [vmem:[%s3472_s1 + $0x358] sm:$0xff] }
  0x42   : > { %2602 = vmatpush3.bf16.msra.mxu0 %v2599_v56  ;;  %2476 = vmatprep.subr.bf16.mxu1 %v2475_v62  ;;  %v562_v56 = vld [vmem:[#allocation2 + $0x2] sm:$0xff]  ;;  %v2627_v58 = vpack.c.bf16 %v1762_v55, %v1761_v54 }
  0x43   : > { %2604 = vmatprep.subr.bf16.mxu0 %v2603_v63  ;;  %v1712_v54 = vld [vmem:[%s3472_s1 + $0x1c8] sm:$0xff]  ;;  %v1775_v55 = vld [vmem:[%s3472_s1 + $0x3c0] sm:$0xff] }
  0x45   : > { %2478 = vmatpush3.bf16.msra.mxu1 %v2475_v62  ;;  %v1763_v62 = vld [vmem:[%s3472_s1 + $0x360] sm:$0xff] }
  0x46   : > { %2606 = vmatpush3.bf16.msra.mxu0 %v2603_v63  ;;  %2480 = vmatprep.subr.bf16.mxu1 %v2479_v6  ;;  %v1764_v63 = vld [vmem:[%s3472_s1 + $0x368] sm:$0xff] }
  0x47   : > { %2608 = vmatprep.subr.bf16.mxu0 %v2607_v9  ;;  %v2631_v2 = vpack.c.bf16 %v1764_v63, %v1763_v62  ;;  %v1714_v62 = vld [vmem:[%s3472_s1 + $0x1d8] sm:$0xff]  ;;  %v1777_v63 = vld [vmem:[%s3472_s1 + $0x3d0] sm:$0xff] }
  0x48   : > { %2096 = vmatmul.mubr.f32.vlgmr.msra.gmra.mrb[0].mxu1 %v3162_v15 }
  0x49   : > { %2482 = vmatpush3.bf16.msra.mxu1 %v2479_v6  ;;  %2272 = vmatmul.mubr.f32.vlgmr.msra.gmra.mrb[0].mxu0 %v3164_v17  ;;  %v1765_v6 = vld [vmem:[%s3472_s1 + $0x370] sm:$0xff] }
  0x4a   : > { %2610 = vmatpush3.bf16.msra.mxu0 %v2607_v9  ;;  %2484 = vmatprep.subr.bf16.mxu1 %v2483_v18  ;;  %v1766_v9 = vld [vmem:[%s3472_s1 + $0x378] sm:$0xff] }
  0x4b   : > { %2612 = vmatprep.subr.bf16.mxu0 %v2611_v19  ;;  %2098 = vmatprep.mubr.f32.mxu1 %v3179_v24  ;;  %v2635_v11 = vpack.c.bf16 %v1766_v9, %v1765_v6  ;;  %v1716_v6 = vld [vmem:[%s3472_s1 + $0x1e8] sm:$0xff]  ;;  %v1779_v9 = vld [vmem:[%s3472_s1 + $0x3e0] sm:$0xff] }
  0x4c   : > { %2274 = vmatprep.mubr.f32.mxu0 %v3182_v25  ;;  %2099 = vmatmul.mubr.f32.gmra.mrb[2].mxu1 %v3184_v26 }
  0x4d   : > { %2486 = vmatpush3.bf16.msra.mxu1 %v2483_v18  ;;  %2275 = vmatmul.mubr.f32.gmra.mrb[2].mxu0 %v3186_v28  ;;  %v1767_v18 = vld [vmem:[%s3472_s1 + $0x380] sm:$0xff] }
  0x4e   : > { %2614 = vmatpush3.bf16.msra.mxu0 %v2611_v19  ;;  %2488 = vmatprep.subr.bf16.mxu1 %v2487_v27  ;;  %v1768_v19 = vld [vmem:[%s3472_s1 + $0x388] sm:$0xff] }
  0x4f   : > { %2616 = vmatprep.subr.bf16.mxu0 %v2615_v29  ;;  %2101 = vmatprep.mubr.f32.mxu1 %v3203_v34  ;;  %v2639_v21 = vpack.c.bf16 %v1768_v19, %v1767_v18 }
  0x50   : > { %2277 = vmatprep.mubr.f32.mxu0 %v3206_v35  ;;  %2102 = vmatmul.mubr.f32.gmra.mrb[4].mxu1 %v3208_v36 }
  0x51   : > { %2490 = vmatpush3.bf16.msra.mxu1 %v2487_v27  ;;  %2278 = vmatmul.mubr.f32.gmra.mrb[4].mxu0 %v3210_v38  ;;  %v1769_v27 = vld [vmem:[%s3472_s1 + $0x390] sm:$0xff] }
  0x52   : > { %2618 = vmatpush3.bf16.msra.mxu0 %v2615_v29  ;;  %2492 = vmatprep.subr.bf16.mxu1 %v2491_v37  ;;  %v1770_v29 = vld [vmem:[%s3472_s1 + $0x398] sm:$0xff] }
  0x53   : > { %2620 = vmatprep.subr.bf16.mxu0 %v2619_v39  ;;  %2104 = vmatprep.mubr.f32.mxu1 %v3227_v45  ;;  %v2643_v31 = vpack.c.bf16 %v1770_v29, %v1769_v27  ;;  %v1786_v27 = vld [vmem:[%s3472_s1 + $0x418] sm:$0xff] }
  0x54   : > { %2280 = vmatprep.mubr.f32.mxu0 %v3230_v46  ;;  %2105 = vmatmul.mubr.f32.gmra.mrb[6].mxu1 %v3232_v47  ;;  %v2675_v29 = vpack.c.bf16 %v1786_v27, %v1785_v23 }
  0x55   : > { %2494 = vmatpush3.bf16.msra.mxu1 %v2491_v37  ;;  %2281 = vmatmul.mubr.f32.gmra.mrb[6].mxu0 %v3234_v50  ;;  %v1771_v37 = vld [vmem:[%s3472_s1 + $0x3a0] sm:$0xff] }
  0x56   : > { %2622 = vmatpush3.bf16.msra.mxu0 %v2619_v39  ;;  %2496 = vmatprep.subr.bf16.mxu1 %v2495_v49  ;;  %v1772_v39 = vld [vmem:[%s3472_s1 + $0x3a8] sm:$0xff] }
  0x57   : > { %2624 = vmatprep.subr.bf16.mxu0 %v2623_v51  ;;  %2139 = vmatprep.mubr.f32.mxu1 %v562_v56  ;;  %v2647_v41 = vpack.c.bf16 %v1772_v39, %v1771_v37  ;;  %v1776_v56 = vld [vmem:[%s3472_s1 + $0x3c8] sm:$0xff]  ;;  %v1797_v37 = vld [vmem:[%s3472_s1 + $0x470] sm:$0xff]  ;;  %v1798_v39 = vld [vmem:[%s3472_s1 + $0x478] sm:$0xff] }
  0x58   : > { %2315 = vmatprep.mubr.f32.mxu0 %v3179_v24  ;;  %v2655_v60 = vpack.c.bf16 %v1776_v56, %v1775_v55 }
  0x59   : > { %2498 = vmatpush3.bf16.msra.mxu1 %v2495_v49  ;;  %v1774_v49 = vld [vmem:[%s3472_s1 + $0x3b8] sm:$0xff] }
  0x5a   : > { %2626 = vmatpush3.bf16.msra.mxu0 %v2623_v51  ;;  %2500 = vmatprep.subr.bf16.mxu1 %v2499_v57  ;;  %v2651_v52 = vpack.c.bf16 %v1774_v49, %v1773_v44 }
  0x5b   : > { %2628 = vmatprep.subr.bf16.mxu0 %v2627_v58 }
  0x5d   : > { %2502 = vmatpush3.bf16.msra.mxu1 %v2499_v57  ;;  %v3347_v57 = vld [vmem:[#allocation2 + $0x80] sm:$0xff] }
  0x5e   : > { %2630 = vmatpush3.bf16.msra.mxu0 %v2627_v58  ;;  %2504 = vmatprep.subr.bf16.mxu1 %v2503_v1  ;;  %v2527_v58 = vpack.c.bf16 %v1712_v54, %v1711_v53 }
  0x5f   : > { %2632 = vmatprep.subr.bf16.mxu0 %v2631_v2 }
  0x61   : > { %2506 = vmatpush3.bf16.msra.mxu1 %v2503_v1  ;;  %v1778_v1 = vld [vmem:[%s3472_s1 + $0x3d8] sm:$0xff] }
  0x62   : > { %2634 = vmatpush3.bf16.msra.mxu0 %v2631_v2  ;;  %2508 = vmatprep.subr.bf16.mxu1 %v2507_v10  ;;  %v2531_v2 = vpack.c.bf16 %v1714_v62, %v1713_v61  ;;  %v2659_v4 = vpack.c.bf16 %v1778_v1, %v1777_v63 }
  0x63   : > { %2636 = vmatprep.subr.bf16.mxu0 %v2635_v11 }
  0x65   : > { %2510 = vmatpush3.bf16.msra.mxu1 %v2507_v10  ;;  %v2535_v10 = vpack.c.bf16 %v1716_v6, %v1715_v5 }
  0x66   : > { %2638 = vmatpush3.bf16.msra.mxu0 %v2635_v11  ;;  %2512 = vmatprep.subr.bf16.mxu1 %v2511_v20 }
  0x67   : > { %2640 = vmatprep.subr.bf16.mxu0 %v2639_v21 }
  0x68   : > { %2140 = vmatmul.mubr.f32.vlgmr.msra.gmra.mrb[0].mxu1 %v3110_v48  ;;  %v1709_v48 = vld [vmem:[%s3472_s1 + $0x1b0] sm:$0xff] }
  0x69   : > { %2514 = vmatpush3.bf16.msra.mxu1 %v2511_v20  ;;  %2316 = vmatmul.mubr.f32.vlgmr.msra.gmra.mrb[0].mxu0 %v3184_v26  ;;  %v2523_v51 = vpack.c.bf16 %v1710_v42, %v1709_v48  ;;  %v1783_v20 = vld [vmem:[%s3472_s1 + $0x400] sm:$0xff] }
  0x6a   : > { %2642 = vmatpush3.bf16.msra.mxu0 %v2639_v21  ;;  %2516 = vmatprep.subr.bf16.mxu1 %v2515_v30  ;;  %v1784_v21 = vld [vmem:[%s3472_s1 + $0x408] sm:$0xff] }
  0x6b   : > { %2644 = vmatprep.subr.bf16.mxu0 %v2643_v31  ;;  %2142 = vmatprep.mubr.f32.mxu1 %v3164_v17  ;;  %v2671_v22 = vpack.c.bf16 %v1784_v21, %v1783_v20 }
  0x6c   : > { %2318 = vmatprep.mubr.f32.mxu0 %v3203_v34  ;;  %2143 = vmatmul.mubr.f32.gmra.mrb[2].mxu1 %v3182_v25 }
  0x6d   : > { %2518 = vmatpush3.bf16.msra.mxu1 %v2515_v30  ;;  %2319 = vmatmul.mubr.f32.gmra.mrb[2].mxu0 %v3208_v36  ;;  %v1787_v30 = vld [vmem:[%s3472_s1 + $0x420] sm:$0xff] }
  0x6e   : > { %2646 = vmatpush3.bf16.msra.mxu0 %v2643_v31  ;;  %2520 = vmatprep.subr.bf16.mxu1 %v2519_v40  ;;  %v1788_v31 = vld [vmem:[%s3472_s1 + $0x428] sm:$0xff] }
  0x6f   : > { %2648 = vmatprep.subr.bf16.mxu0 %v2647_v41  ;;  %2145 = vmatprep.mubr.f32.mxu1 %v3186_v28  ;;  %v2679_v32 = vpack.c.bf16 %v1788_v31, %v1787_v30 }
  0x70   : > { %2321 = vmatprep.mubr.f32.mxu0 %v3227_v45  ;;  %2146 = vmatmul.mubr.f32.gmra.mrb[4].mxu1 %v3206_v35 }
  0x71   : > { %2522 = vmatpush3.bf16.msra.mxu1 %v2519_v40  ;;  %2322 = vmatmul.mubr.f32.gmra.mrb[4].mxu0 %v3232_v47  ;;  %v2699_v40 = vpack.c.bf16 %v1798_v39, %v1797_v37 }
  0x72   : > { %2650 = vmatpush3.bf16.msra.mxu0 %v2647_v41  ;;  %2524 = vmatprep.subr.bf16.mxu1 %v2523_v51 }
  0x73   : > { %2652 = vmatprep.subr.bf16.mxu0 %v2651_v52  ;;  %2148 = vmatprep.mubr.f32.mxu1 %v3210_v38 }
  0x74   : > { %2324 = vmatprep.mubr.f32.mxu0 %v3347_v57  ;;  %2149 = vmatmul.mubr.f32.gmra.mrb[6].mxu1 %v3230_v46 }
  0x75   : > { %2526 = vmatpush3.bf16.msra.mxu1 %v2523_v51  ;;  %2325 = vmatmul.mubr.f32.gmra.mrb[6].mxu0 %v2800_v7  ;;  %v1780_v7 = vld [vmem:[%s3472_s1 + $0x3e8] sm:$0xff] }
  0x76   : > { %2654 = vmatpush3.bf16.msra.mxu0 %v2651_v52  ;;  %2528 = vmatprep.subr.bf16.mxu1 %v2527_v58  ;;  %v2663_v11 = vpack.c.bf16 %v1780_v7, %v1779_v9 }
  0x77   : > { %2656 = vmatprep.subr.bf16.mxu0 %v2655_v60  ;;  %2183 = vmatprep.mubr.f32.mxu1 %v3162_v15  ;;  %v1717_v15 = vld [vmem:[%s3472_s1 + $0x1f0] sm:$0xff] }
  0x78   : > { %2359 = vmatprep.mubr.f32.mxu0 %v2965_v43  ;;  %v1782_v43 = vld [vmem:[%s3472_s1 + $0x3f8] sm:$0xff]  ;;  %v2539_v18 = vpack.c.bf16 %v1718_v12, %v1717_v15 }
  0x79   : > { %2530 = vmatpush3.bf16.msra.mxu1 %v2527_v58  ;;  %v2667_v19 = vpack.c.bf16 %v1782_v43, %v1781_v14 }
  0x7a   : > { %2658 = vmatpush3.bf16.msra.mxu0 %v2655_v60  ;;  %2532 = vmatprep.subr.bf16.mxu1 %v2531_v2 }
  0x7b   : > { %2660 = vmatprep.subr.bf16.mxu0 %v2659_v4 }
  0x7d   : > { %2534 = vmatpush3.bf16.msra.mxu1 %v2531_v2 }
  0x7e   : > { %2662 = vmatpush3.bf16.msra.mxu0 %v2659_v4  ;;  %2536 = vmatprep.subr.bf16.mxu1 %v2535_v10 }
  0x7f   : > { %2664 = vmatprep.subr.bf16.mxu0 %v2663_v11 }
  0x81   : > { %2538 = vmatpush3.bf16.msra.mxu1 %v2535_v10 }
  0x82   : > { %2666 = vmatpush3.bf16.msra.mxu0 %v2663_v11  ;;  %2540 = vmatprep.subr.bf16.mxu1 %v2539_v18 }
  0x83   : > { %2668 = vmatprep.subr.bf16.mxu0 %v2667_v19 }
  0x85   : > { %2542 = vmatpush3.bf16.msra.mxu1 %v2539_v18 }
  0x86   : > { %2670 = vmatpush3.bf16.msra.mxu0 %v2667_v19  ;;  %2703 = vmatprep.subr.bf16.mxu1 %v2671_v22 }
  0x87   : > { %2672 = vmatprep.subr.bf16.mxu0 %v2671_v22 }
  0x88   : > { %2184 = vmatmul.mubr.f32.vlgmr.msra.gmra.mrb[0].mxu1 %v3179_v24  ;;  %v1789_v24 = vld [vmem:[%s3472_s1 + $0x430] sm:$0xff] }
  0x89   : > { %2360 = vmatmul.mubr.f32.vlgmr.msra.gmra.mrb[0].mxu0 %v2992_v59  ;;  %2711 = vmatpush3.bf16.msra.mxu1 %v2671_v22  ;;  %v2683_v59 = vpack.c.bf16 %v1790_v33, %v1789_v24 }
  0x8a   : > { %2674 = vmatpush3.bf16.msra.mxu0 %v2671_v22  ;;  %2186 = vmatprep.mubr.f32.mxu1 %v3184_v26  ;;  %v1792_v26 = vld [vmem:[%s3472_s1 + $0x448] sm:$0xff] }
  0x8b   : > { %2362 = vmatprep.mubr.f32.mxu0 %v3002_v0  ;;  %2676 = vmatprep.subr.bf16.mxu0 %v2675_v29  ;;  %v1791_v0 = vld [vmem:[%s3472_s1 + $0x440] sm:$0xff] }
  0x8c   : > { %2187 = vmatmul.mubr.f32.gmra.mrb[2].mxu1 %v3203_v34  ;;  %2704 = vmatprep.subr.bf16.mxu1 %v2675_v29  ;;  %v1793_v34 = vld [vmem:[%s3472_s1 + $0x450] sm:$0xff] }
  0x8d   : > { %2363 = vmatmul.mubr.f32.gmra.mrb[2].mxu0 %v3007_v3  ;;  %2712 = vmatpush3.bf16.msra.mxu1 %v2675_v29  ;;  %v1260_v3 = vld [vmem:[#allocation2 + $0x91] sm:$0xff] }
  0x8e   : > { %2678 = vmatpush3.bf16.msra.mxu0 %v2675_v29  ;;  %2189 = vmatprep.mubr.f32.mxu1 %v3208_v36  ;;  %v1794_v36 = vld [vmem:[%s3472_s1 + $0x458] sm:$0xff] }
  0x8f   : > { %2365 = vmatprep.mubr.f32.mxu0 %v3012_v8  ;;  %2680 = vmatprep.subr.bf16.mxu0 %v2679_v32  ;;  %v2687_v8 = vpack.c.bf16 %v1792_v26, %v1791_v0 }
  0x90   : > { %2190 = vmatmul.mubr.f32.gmra.mrb[4].mxu1 %v3227_v45  ;;  %2705 = vmatprep.subr.bf16.mxu1 %v2679_v32  ;;  %v1796_v45 = vld [vmem:[%s3472_s1 + $0x468] sm:$0xff] }
  0x91   : > { %2366 = vmatmul.mubr.f32.gmra.mrb[4].mxu0 %v3022_v13  ;;  %2713 = vmatpush3.bf16.msra.mxu1 %v2679_v32  ;;  %v2691_v13 = vpack.c.bf16 %v1794_v36, %v1793_v34 }
  0x92   : > { %2682 = vmatpush3.bf16.msra.mxu0 %v2679_v32  ;;  %2192 = vmatprep.mubr.f32.mxu1 %v3232_v47 }
  0x93   : > { %2368 = vmatprep.mubr.f32.mxu0 %v3032_v16  ;;  %2684 = vmatprep.subr.bf16.mxu0 %v2683_v59  ;;  %v1795_v16 = vld [vmem:[%s3472_s1 + $0x460] sm:$0xff] }
  0x94   : > { %2193 = vmatmul.mubr.f32.gmra.mrb[6].mxu1 %v3347_v57  ;;  %2706 = vmatprep.subr.bf16.mxu1 %v2683_v59  ;;  %v2695_v47 = vpack.c.bf16 %v1796_v45, %v1795_v16 }
  0x95   : > { %2369 = vmatmul.mubr.f32.gmra.mrb[6].mxu0 %v1260_v3  ;;  %2714 = vmatpush3.bf16.msra.mxu1 %v2683_v59 }
  0x96   : > { %2686 = vmatpush3.bf16.msra.mxu0 %v2683_v59  ;;  %2707 = vmatprep.subr.bf16.mxu1 %v2687_v8 }
  0x97   : > { %2688 = vmatprep.subr.bf16.mxu0 %v2687_v8  ;;  %2403 = vmatprep.mubr.f32.mxu0 %v3164_v17  ;;  %v1398_v17 = vld [vmem:[#allocation2 + $0x92] sm:$0xff] }
  0x98   : > { %2409 = vmatprep.mubr.f32.mxu1 %v3210_v38 }
  0x99   : > { %2715 = vmatpush3.bf16.msra.mxu1 %v2687_v8 }
  0x9a   : > { %2690 = vmatpush3.bf16.msra.mxu0 %v2687_v8  ;;  %2708 = vmatprep.subr.bf16.mxu1 %v2691_v13 }
  0x9b   : > { %2692 = vmatprep.subr.bf16.mxu0 %v2691_v13 }
  0x9d   : > { %2716 = vmatpush3.bf16.msra.mxu1 %v2691_v13 }
  0x9e   : > { %2694 = vmatpush3.bf16.msra.mxu0 %v2691_v13  ;;  %2709 = vmatprep.subr.bf16.mxu1 %v2695_v47 }
  0x9f   : > { %2696 = vmatprep.subr.bf16.mxu0 %v2695_v47 }
  0xa1   : > { %2717 = vmatpush3.bf16.msra.mxu1 %v2695_v47 }
  0xa2   : > { %2698 = vmatpush3.bf16.msra.mxu0 %v2695_v47  ;;  %2710 = vmatprep.subr.bf16.mxu1 %v2699_v40 }
  0xa3   : > { %2700 = vmatprep.subr.bf16.mxu0 %v2699_v40 }
  0xa5   : > { %2718 = vmatpush3.bf16.msra.mxu1 %v2699_v40 }
  0xa6   : > { %2702 = vmatpush3.bf16.msra.mxu0 %v2699_v40 }
  0xa8   : > { %2410 = vmatmul.mubr.f32.vlgmr.msra.gmra.mrb[8].mxu1 %v3230_v46 }
  0xa9   : > { %2404 = vmatmul.mubr.f32.vlgmr.msra.gmra.mrb[0].mxu0 %v3182_v25  ;;  %2412 = vmatprep.mubr.f32.mxu1 %v3234_v50 }
  0xaa   : > { %2406 = vmatprep.mubr.f32.mxu0 %v3186_v28 }
  0xac   : > { %2413 = vmatmul.mubr.f32.gmra.mrb[10].mxu1 %v1398_v17 }
  0xad   : > { %2407 = vmatmul.mubr.f32.gmra.mrb[2].mxu0 %v3206_v35 }
 0x15b   : > { %v2185_v38 = vpop.f32.mrb[0].mxu1 }
 0x15c   : > { %v791_v41 = vpop.f32.mrb[1].mxu1 }
 0x15f   : > { %v2188_v48 = vpop.f32.mrb[2].mxu1 }
 0x160   : > { %v801_v42 = vpop.f32.mrb[3].mxu1 }
 0x163   : > { %v2191_v44 = vpop.f32.mrb[4].mxu1 }
 0x164   : > { %v2367_v49 = vpop.f32.mrb[4].mxu0  ;;  %v811_v51 = vpop.f32.mrb[5].mxu1 }
 0x165   : > { %v2723_v52 = vadd.f32 %v2367_v49, %v2191_v44  ;;  %v1364_v46 = vpop.f32.mrb[5].mxu0 }
 0x166   : > { %v2725_v53 = vadd.f32 %v1364_v46, %v811_v51 }
 0x167   : > { %v2194_v25 = vpop.f32.mrb[6].mxu1 }
 0x168   : > { %v2370_v54 = vpop.f32.mrb[6].mxu0  ;;  %v821_v50 = vpop.f32.mrb[7].mxu1 }
 0x169   : > { %v2727_v55 = vadd.f32 %v2370_v54, %v2194_v25  ;;  %v1374_v56 = vpop.f32.mrb[7].mxu0 }
 0x16a   : > { %v2729_v28 = vadd.f32 %v1374_v56, %v821_v50 }
 0x17b   : > { %v2411_v35 = vpop.f32.mrb[8].mxu1 }
 0x17c   : > { %v2405_v57 = vpop.f32.mrb[0].mxu0  ;;  %v2724_v58 = vadd.f32 %v2723_v52, %v2411_v35  ;;  %v1502_v60 = vpop.f32.mrb[9].mxu1 }
 0x17d   : > { %v2719_v61 = vadd.f32 %v2405_v57, %v2185_v38  ;;  %v1482_v62 = vpop.f32.mrb[1].mxu0  ;;  %v2726_v63 = vadd.f32 %v2725_v53, %v1502_v60 }
 0x17e   : > { %1570 = vst [vmem:[%s231_s7 + $0x28] sm:$0xff] %v2724_v58  ;;  %v2720_v1 = vadd.f32 %v1482_v62, %v791_v41  ;;  %v1548_v30 = vmul.f32 %v2724_v58, %v2724_v58 }
 0x17f   : > { %v1544_v2 = vmul.f32 %v2719_v61, %v2719_v61  ;;  %1566 = vst [vmem:[%s231_s7 + $0x8] sm:$0xff] %v2719_v61  ;;  %1569 = vst [vmem:[%s231_s7 + $0x20] sm:$0xff] %v2726_v63  ;;  %v2414_v4 = vpop.f32.mrb[10].mxu1  ;;  %v1547_v23 = vmul.f32 %v2726_v63, %v2726_v63 }
 0x180   : > { %v1529_v5 = vadd.f32 %v2720_v1, %v2719_v61  ;;  %v1543_v6 = vmul.f32 %v2720_v1, %v2720_v1  ;;  %1565 = vst [vmem:[%s231_s7] sm:$0xff] %v2720_v1  ;;  %v2408_v9 = vpop.f32.mrb[2].mxu0  ;;  %v2728_v7 = vadd.f32 %v2727_v55, %v2414_v4  ;;  %v1512_v10 = vpop.f32.mrb[11].mxu1 }
 0x181   : > { %v2721_v11 = vadd.f32 %v2408_v9, %v2188_v48  ;;  %v1492_v15 = vpop.f32.mrb[3].mxu0  ;;  %v2730_v12 = vadd.f32 %v2729_v28, %v1512_v10 }
 0x182   : > { %v1551_v14 = vadd.f32 %v1544_v2, %v1543_v6  ;;  %1572 = vst [vmem:[%s231_s7 + $0x38] sm:$0xff] %v2728_v7  ;;  %v2722_v43 = vadd.f32 %v1492_v15, %v801_v42  ;;  %v1550_v0 = vmul.f32 %v2728_v7, %v2728_v7 }
 0x183   : > { %1568 = vst [vmem:[%s231_s7 + $0x18] sm:$0xff] %v2721_v11  ;;  %1571 = vst [vmem:[%s231_s7 + $0x30] sm:$0xff] %v2730_v12  ;;  %v1546_v20 = vmul.f32 %v2721_v11, %v2721_v11  ;;  %v1549_v33 = vmul.f32 %v2730_v12, %v2730_v12 }
 0x184   : > { %v1530_v18 = vadd.f32 %v2722_v43, %v1529_v5  ;;  %v1545_v19 = vmul.f32 %v2722_v43, %v2722_v43  ;;  %1567 = vst [vmem:[%s231_s7 + $0x10] sm:$0xff] %v2722_v43 }
 0x186   : > { %v1531_v21 = vadd.f32 %v2721_v11, %v1530_v18  ;;  %v1552_v22 = vadd.f32 %v1551_v14, %v1545_v19 }
 0x188   : > { %v1553_v27 = vadd.f32 %v1552_v22, %v1546_v20  ;;  %v1532_v29 = vadd.f32 %v2726_v63, %v1531_v21 }
 0x18a   : > { %v1533_v31 = vadd.f32 %v2724_v58, %v1532_v29  ;;  %v1554_v32 = vadd.f32 %v1553_v27, %v1547_v23 }
 0x18c   : > { %v1534_v24 = vadd.f32 %v2730_v12, %v1533_v31  ;;  %v1555_v59 = vadd.f32 %v1554_v32, %v1548_v30 }
 0x18e   : > { %v1535_v26 = vadd.f32 %v2728_v7, %v1534_v24  ;;  %v1556_v3 = vadd.f32 %v1555_v59, %v1549_v33 }
 0x190   : > { %v1536_v8 = vrot.slane %v1535_v26, 4  ;;  %v1557_v34 = vadd.f32 %v1556_v3, %v1550_v0 }
 0x192   : > { %v1537_v36 = vadd.f32 %v1536_v8, %v1535_v26  ;;  %v1558_v13 = vrot.slane %v1557_v34, 4 }
 0x194   : > { %v1538_v16 = vrot.slane %v1537_v36, 2  ;;  %v1559_v45 = vadd.f32 %v1558_v13, %v1557_v34 }
 0x196   : > { %v1539_v47 = vadd.f32 %v1538_v16, %v1537_v36  ;;  %v1560_v37 = vrot.slane %v1559_v45, 2 }
 0x198   : > { %v1540_v39 = vrot.slane %v1539_v47, 1  ;;  %v1561_v40 = vadd.f32 %v1560_v37, %v1559_v45 }
 0x19a   : > { %v1541_v17 = vadd.f32 %v1540_v39, %v1539_v47  ;;  %v1562_v38 = vrot.slane %v1561_v40, 1 }
 0x19c   : > { %1542 = vst [vmem:[%s235_s11] sm:$0x1] %v1541_v17  ;;  %v1563_v41 = vadd.f32 %v1562_v38, %v1561_v40 }
 0x19e   : > { %1564 = vst [vmem:[%s235_s11 + $0x1] sm:$0x1] %v1563_v41 }
 0x19f PF: > { %s16_s18 = sadd.s32 1, %s2798_s18  }
 0x1a0   : > { %p13_p4 = scmp.ge.s32.totalorder %s16_s18, 4  }
 0x1a2   :  { %15 = sbr.rel (!%p13_p4) target bundleno = 1 (0x1), region = 88 }

</bundles_post_ra>
